<compile_context>
chip_gen: v7x
topology: tpu7x:2x2x1
jax: 0.10.0
libtpu: 0.0.40
codegen_flags: <defaults>
</compile_context>

<pallas_src>
import jax
import jax.numpy as jnp
from jax.experimental import pallas as pl
from jax.experimental.pallas import tpu as pltpu

B = 1          # batch (matches x248 = torch.randn([1, 1280]))
IN_F = 1280    # Linear in_features
OUT_F = 1000   # Linear out_features
OUT_PAD = 1024  # lane-dense padded out_features (multiple of 128)
N_SPLIT = 2    # shard N across 2 blocks (2 TCs on v7x; harmless elsewhere)


def linear_kernel(x_ref, w_ref, b_ref, o_ref):
    # x: [B, IN_F] f32, w: [IN_F, OUT_PAD/N_SPLIT] bf16, b: [1, OUT_PAD/N_SPLIT] f32
    # bf16 x bf16 products are exact in f32; accumulate in f32 on the MXU.
    x_bf16 = x_ref[...].astype(jnp.bfloat16)
    acc = jnp.dot(x_bf16, w_ref[...], preferred_element_type=jnp.float32)
    o_ref[...] = (acc + b_ref[...]).astype(o_ref.dtype)


def linear_pallas(x, w_t_bf16, b_pad):
    # x: [B, IN_F] f32, w_t_bf16: [IN_F, OUT_PAD] bf16, b_pad: [1, OUT_PAD] f32
    Bm, K = x.shape
    _, Np = w_t_bf16.shape
    assert Np % N_SPLIT == 0 and (Np // N_SPLIT) % 128 == 0
    Nt = Np // N_SPLIT

    cost = pl.CostEstimate(
        flops=2 * Bm * K * Np,
        transcendentals=0,
        bytes_accessed=(Bm * K * 4) + (K * Np * 2) + (Np * 4) + (Bm * Np * 4),
    )

    out_pad = pl.pallas_call(
        linear_kernel,
        out_shape=jax.ShapeDtypeStruct((Bm, Np), jnp.float32),
        grid_spec=pltpu.PrefetchScalarGridSpec(
            num_scalar_prefetch=0,
            grid=(N_SPLIT,),
            in_specs=[
                pl.BlockSpec((Bm, K), lambda j: (0, 0)),   # x: same block every step
                pl.BlockSpec((K, Nt), lambda j: (0, j)),   # weight: N-sharded
                pl.BlockSpec((1, Nt), lambda j: (0, j)),   # bias: N-sharded
            ],
            out_specs=pl.BlockSpec((Bm, Nt), lambda j: (0, j)),
        ),
        compiler_params=pltpu.CompilerParams(
            dimension_semantics=("parallel",),  # lets v7x split across its 2 TCs
        ),
        cost_estimate=cost,
    )(x, w_t_bf16, b_pad)

    # Slice padded lanes back off (columns 1000..1023 are exactly zero anyway).
    return out_pad[:, :OUT_F]


if __name__ == "__main__":
    key = jax.random.PRNGKey(0)
    kx, kw, kb = jax.random.split(key, 3)

    # Deterministic synthetic parameters (PyTorch-style uniform(-1/sqrt(fan_in), ...))
    bound = 1.0 / (IN_F ** 0.5)
    x = jax.random.normal(kx, (B, IN_F), dtype=jnp.float32)
    w = jax.random.uniform(kw, (OUT_F, IN_F), dtype=jnp.float32,
                           minval=-bound, maxval=bound)   # PyTorch weight layout
    b = jax.random.uniform(kb, (OUT_F,), dtype=jnp.float32,
                           minval=-bound, maxval=bound)

    # Kernel-side parameter prep: transpose, bf16-quantize, pad N to 1024.
    w_t = jnp.transpose(w)                                   # [IN_F, OUT_F]
    w_t_bf16 = jnp.zeros((IN_F, OUT_PAD), dtype=jnp.bfloat16)
    w_t_bf16 = w_t_bf16.at[:, :OUT_F].set(w_t.astype(jnp.bfloat16))
    b_pad = jnp.zeros((1, OUT_PAD), dtype=jnp.float32)
    b_pad = b_pad.at[0, :OUT_F].set(b)

    out = linear_pallas(x, w_t_bf16, b_pad)
    jax.block_until_ready(out)
    assert out.shape == (B, OUT_F)

    # Reference 1: same bf16-quantized math in plain XLA (tight tolerance).
    x_bf16_f32 = x.astype(jnp.bfloat16).astype(jnp.float32)
    w_bf16_f32 = w_t_bf16[:, :OUT_F].astype(jnp.float32)
    ref_q = x_bf16_f32 @ w_bf16_f32 + b[None, :]
    assert jnp.allclose(out, ref_q, atol=1e-4, rtol=1e-4)

    # Reference 2: full-precision PyTorch-equivalent Linear (loose tolerance,
    # accounts for the sanctioned bf16 weight/activation quantization).
    ref_full = x @ w_t + b[None, :]
    assert jnp.allclose(out, ref_full, atol=2e-2, rtol=2e-2)

    print("KERNEL_OK")
</pallas_src>

<mosaic_0001>
module attributes {stable_mosaic.version = 11 : i64} {
  func.func @linear_kernel(%arg0: i32, %arg1: memref<1x1280xf32, #tpu.memory_space<vmem>>, %arg2: memref<1280x512xbf16, #tpu.memory_space<vmem>>, %arg3: memref<1x512xf32, #tpu.memory_space<vmem>>, %arg4: memref<1x512xf32, #tpu.memory_space<vmem>>) attributes {dimension_semantics = [#tpu.dimension_semantics<parallel>], iteration_bounds = array<i64: 2>, scalar_prefetch = 0 : i64, scratch_operands = 0 : i64, tpu.core_type = #tpu.core_type<tc>, window_params = [{pipeline_mode = #tpu.pipeline_mode<synchronous>, transform_indices = @transform_0, window_bounds = array<i64: 1, 1280>}, {transform_indices = @transform_1, window_bounds = array<i64: 1280, 512>}, {transform_indices = @transform_2, window_bounds = array<i64: 1, 512>}, {transform_indices = @transform_3, window_bounds = array<i64: 1, 512>}]} {
    %c0 = arith.constant 0 : index
    %c0_0 = arith.constant 0 : index
    %0 = vector.load %arg1[%c0, %c0_0] : memref<1x1280xf32, #tpu.memory_space<vmem>>, vector<1x1280xf32>
    %1 = arith.truncf %0 : vector<1x1280xf32> to vector<1x1280xbf16>
    %c0_1 = arith.constant 0 : index
    %c0_2 = arith.constant 0 : index
    %2 = vector.load %arg2[%c0_1, %c0_2] : memref<1280x512xbf16, #tpu.memory_space<vmem>>, vector<1280x512xbf16>
    %cst = arith.constant dense<0.000000e+00> : vector<1x512xf32>
    %3 = tpu.matmul %1, %2, %cst {dimension_numbers = #tpu.dot_dimension_numbers<[1], [0], [0], [1], [0, 0, 1, 1], [], []>} : vector<1x1280xbf16>, vector<1280x512xbf16>, vector<1x512xf32> -> vector<1x512xf32>
    %c0_3 = arith.constant 0 : index
    %c0_4 = arith.constant 0 : index
    %4 = vector.load %arg3[%c0_3, %c0_4] : memref<1x512xf32, #tpu.memory_space<vmem>>, vector<1x512xf32>
    %5 = arith.addf %3, %4 : vector<1x512xf32>
    %c0_5 = arith.constant 0 : index
    %c0_6 = arith.constant 0 : index
    %6 = vector.load %arg4[%c0_5, %c0_6] : memref<1x512xf32, #tpu.memory_space<vmem>>, vector<1x512xf32>
    tpu.vector_store %arg4[%c0_5, %c0_6], %5 {strides = array<i32>} : memref<1x512xf32, #tpu.memory_space<vmem>>, vector<1x512xf32>,
    return
  }
  func.func @transform_0(%arg0: i32) -> (i32, i32) {
    %c0_i32 = arith.constant 0 : i32
    %c0_i32_0 = arith.constant 0 : i32
    %c0_i32_1 = arith.constant 0 : i32
    return %c0_i32, %c0_i32_0 : i32, i32
  }
  func.func @transform_1(%arg0: i32) -> (i32, i32) {
    %c0_i32 = arith.constant 0 : i32
    %c0_i32_0 = arith.constant 0 : i32
    return %c0_i32, %arg0 : i32, i32
  }
  func.func @transform_2(%arg0: i32) -> (i32, i32) {
    %c0_i32 = arith.constant 0 : i32
    %c0_i32_0 = arith.constant 0 : i32
    return %c0_i32, %arg0 : i32, i32
  }
  func.func @transform_3(%arg0: i32) -> (i32, i32) {
    %c0_i32 = arith.constant 0 : i32
    %c0_i32_0 = arith.constant 0 : i32
    return %c0_i32, %arg0 : i32, i32
  }
}

</mosaic_0001>

<bundles_post_ra>
// kernel: tpu_custom_call.1
= control target key start
LH: loop header
LB: loop body
LE: loop exit
PB: predicated region body
PF: predicated region fallthrough
CT: control target
= control target key end

     0   :  { %8 = vsyncpa [#allocation3], 0  ;;  %s4524_s0 = inlined_call_operand.hbm [shape: f32[1,1280], index: 0, kind: input, shape index: {}]   ;;  %s4525_s1 = inlined_call_operand.hbm [shape: bf16[1280,1024], index: 1, kind: input, shape index: {}]   ;;  %s4526_s2 = inlined_call_operand.hbm [shape: f32[1,1024], index: 2, kind: input, shape index: {}]   ;;  %s4527_s3 = inlined_call_operand.hbm [shape: f32[1,1024], index: 3, kind: output, shape index: {}]  }
   0x1   :  { %9 = vsyncpa [#allocation6], 0 }
   0x2   :  { %11 = vsyncpa [#allocation6 + $0x1], 0 }
   0x3   :  { %12 = vsyncpa [#allocation4], 0 }
   0x4   :  { %14 = vsyncpa [#allocation4 + $0x1], 0  ;;  %s3921_s12 = smov 0   ;;  %s3923_s13 = smov 0  }
   0x5   :  { %s3925_s14 = smov 0   ;;  %s3927_s15 = smov 0  }
   0x6 LB: > { %s3942_s16 = sadd.s32 1, %s3891_s15   ;;  %s48_s17 = sadd.s32 1, %s3887_s14  ;;  %s3891_s15 = sphi %s3927_s15, %s4554_s15   ;;  %s3887_s14 = sphi %s3925_s14, %s4553_s14   ;;  %s3883_s13 = sphi %s3923_s13, %s4552_s13   ;;  %s3879_s12 = sphi %s3921_s12, %s4551_s12  }
   0x7   : > { %s45_s18 = ssub.s32 %s3891_s15, %s3942_s16  ;;  %p55_p0 = scmp.ne.s32.totalorder %s3887_s14, %s3883_s13 }
   0x8   : > { %p46_p1 = scmp.eq.s32.totalorder %s45_s18, 0  ;;  %p56_p2 = scmp.eq.s32.totalorder %s3891_s15, 0 }
   0x9   : > { %p3212_p4 = scmp.lt.s32.totalorder %s3891_s15, 2  ;;  %s148_s20 = sand.u32 1, %s3891_s15  }
   0xa   : > { %s3953_s19 = scalar_select %p46_p1, %s3887_s14, %s48_s17  }
   0xb   : > { %p57_p5 = por %p56_p2, %p55_p0  ;;  %s150_s21 = sand.u32 1, %s3887_s14  }
   0xc   : > { %s3184_s22 = smul.u32 2560, %s150_s21  ;;  %s3145_s23 = sshll.u32 %s3891_s15, 8 }
   0xd   : > { %s3966_s26 = scalar_lea.hbm %s4525_s1, %s3145_s23  ;;  %p3968_p6 = pnand %p3212_p4, %p57_p5 }
   0xe   : > { %s152_s28 = scalar_lea.vmem [#allocation5], %s3184_s22  ;;  %s3974_s30 = scalar_lea.sflag [#allocation6], %s148_s20 }
   0xf   : > { %s4535_s27 = scalar_select %p3968_p6, 1, 0 }
  0x10   : > { %s159_s29 = sshll.u32 %s152_s28, 4  ;;  %s3733_s4 = scalar_lea.hbm %s3966_s26, 40960  ;;  %s3972_s29 = int_to_ptr.vmem [resolvable:$true] %s159_s29 }
  0x11   : > { %p3734_p7 = scmp.ne.s32.totalorder %s3966_s26, %s3733_s4  ;;  %p4529_p8 = pneg %p3968_p6 }
  0x12   : > { %s3738_s7 = scalar_lea.hbm %s4525_s1, 81920  ;;  %p3739_p11 = scmp.lt.u32.totalorder %s3966_s26, %s4525_s1 }
  0x13   : > { %p3736_p9 = pnand %p4529_p8, %p3734_p7  ;;  %p3740_p12 = scmp.lt.u32.totalorder %s3738_s7, %s3733_s4 }
  0x14   : > { %p3742_p1 = scmp.lt.u32.totalorder %s3733_s4, %s3966_s26 }
  0x15   : > { %p3737_p10 = pneg %p3736_p9  ;;  %p3741_p13 = por %p3740_p12, %p3739_p11 }
  0x17   : > { %p3743_p2 = por %p3742_p1, %p3741_p13 }
  0x19   : > { %p3744_p4 = pnand %p3743_p2, %p3737_p10 }
  0x1b   : > { %3747 = shalt.err (!%p3744_p4)
}
  0x1c   : > { %s3748_s10 = scalar_lea.vmem %s3972_s29, 40960  ;;  %s3893_s11 = smov [#allocation5]  }
  0x1d   : > { %p3749_p5 = scmp.ne.s32.totalorder %s3972_s29, %s3748_s10  ;;  %s3753_s17 = sshll.u32 %s3893_s11, 4  ;;  %s3754_s17 = int_to_ptr.vmem [resolvable:$false] %s3753_s17 }
  0x1e   : > { %s3755_s18 = scalar_lea.vmem %s3754_s17, 81920  ;;  %p3756_p3 = scmp.lt.s32.totalorder %s3972_s29, %s3754_s17 }
  0x1f   : > { %p3751_p7 = pnand %p3749_p5, %p4529_p8  ;;  %p3757_p11 = scmp.lt.s32.totalorder %s3755_s18, %s3748_s10 }
  0x21   : > { %p3752_p9 = pneg %p3751_p7  ;;  %p3758_p12 = por %p3757_p11, %p3756_p3 }
  0x23   : > { %p3759_p13 = pnand %p3758_p12, %p3752_p9 }
  0x25   : > { %3762 = shalt.err (!%p3759_p13)
}
  0x26   : > { %s3894_s20 = smov 512   ;;  %s3895_s22 = smov 256  }
  0x27   : > { %s3896_s23 = smov 16   ;;  %s4003_s24 = sadd.s32 4294967295, %s3891_s15  }
  0x28   : > { %3203 = dma.hbm_to_vmem [thread:$0]  (!%p3968_p6), %s3966_s26, 40960, %s3972_s29, %s3974_s30, %s3894_s20, %s3895_s22, %s3896_s23  }
  0x29   : > { %s2807_s25 = sadd.s32 4294967294, %s3891_s15   ;;  %p61_p3 = scmp.ne.s32.totalorder %s3883_s13, %s3879_s12 }
  0x2a   : > { %p4528_p10 = scmp.eq.s32.totalorder %s4003_s24, 0  ;;  %p111_p1 = scmp.eq.s32.totalorder %s4003_s24, 1 }
  0x2b   : > { %p117_p2 = scmp.eq.s32.totalorder %s2807_s25, 1  ;;  %p2808_p4 = scmp.ge.s32.totalorder %s3891_s15, 1 }
  0x2c   : > { %p4013_p5 = por %p4528_p10, %p61_p3  ;;  %p4020_p7 = por %p111_p1, %p55_p0 }
  0x2d   : > { %p4024_p9 = por %p117_p2, %p61_p3  ;;  %p124_p11 = scmp.lt.s32.totalorder %s3891_s15, 3 }
  0x2e   : > { %s4536_s28 = scalar_select %p4013_p5, 1, 0 }
  0x2f   : > { %s4537_s26 = scalar_select %p4020_p7, 1, 0 }
  0x30   : > { %s4538_s29 = scalar_select %p4024_p9, 1, 0 }
  0x31   : > { %p4029_p12 = pnand %p2808_p4, %p124_p11  ;;  %s3897_s5 = smov [#allocation2]  }
  0x32   : > { %s137_s6 = sshll.u32 %s3897_s5, 4  ;;  %s2813_s7 = sshll.u32 %s150_s21, 2  ;;  %s138_s6 = int_to_ptr.vmem [resolvable:$true] %s137_s6 }
  0x33   : > { %s4539_s4 = scalar_select %p4029_p12, 1, 0 }
  0x34   : > { %p3196_p13 = pneg %p4029_p12  ;;  %s3146_s8 = sshll.u32 %s3891_s15, 6 }
  0x35   : > { %s173_s9 = scalar_lea.vmem [#allocation7], %s2813_s7  ;;  %s4047_s20 = scalar_lea.hbm %s4526_s2, %s3146_s8 }
  0x36   : > { %s181_s10 = sshll.u32 %s173_s9, 4  ;;  %p4040_p0 = pnand %p3196_p13, %p4528_p10  ;;  %s4049_s10 = int_to_ptr.vmem [resolvable:$true] %s181_s10 }
  0x37   : > { %s3763_s23 = scalar_lea.hbm %s4524_s0, 160 }
  0x38   : > { %p3764_p3 = scmp.ne.s32.totalorder %s4524_s0, %s3763_s23  ;;  %p3765_p1 = pneg %p4040_p0 }
  0x39   : > { %p3770_p11 = scmp.lt.u32.totalorder %s3763_s23, %s4524_s0 }
  0x3a   : > { %p3766_p2 = pnand %p3765_p1, %p3764_p3 }
  0x3c   : > { %p3767_p4 = pneg %p3766_p2 }
  0x3e   : > { %p3772_p13 = pnand %p3770_p11, %p3767_p4 }
  0x40   : > { %3775 = shalt.err (!%p3772_p13)
}
  0x41   : > { %s3776_s8 = scalar_lea.vmem %s138_s6, 160  ;;  %p3784_p7 = scmp.lt.s32.totalorder %s138_s6, %s138_s6 }
  0x42   : > { %p3777_p10 = scmp.ne.s32.totalorder %s138_s6, %s3776_s8  ;;  %p3785_p5 = scmp.lt.s32.totalorder %s3776_s8, %s3776_s8 }
  0x44   : > { %p3779_p8 = pnand %p3777_p10, %p3765_p1  ;;  %p3786_p12 = por %p3785_p5, %p3784_p7 }
  0x46   : > { %p3780_p9 = pneg %p3779_p8 }
  0x48   : > { %p3787_p6 = pnand %p3786_p12, %p3780_p9 }
  0x4a   : > { %3790 = shalt.err (!%p3787_p6)
}
  0x4b   : > { %3199 = dma.hbm_to_vmem [thread:$0]  (!%p4040_p0), %s4524_s0, 160, %s138_s6, [#allocation3]  }
  0x4c   : > { %s3791_s21 = scalar_lea.hbm %s4047_s20, 64  ;;  %p4541_p10 = scmp.ne.s32.totalorder %s4535_s27, 0 }
  0x4d   : > { %p3792_p3 = scmp.ne.s32.totalorder %s4047_s20, %s3791_s21  ;;  %s3796_s25 = scalar_lea.hbm %s4526_s2, 128 }
  0x4e   : > { %p4542_p8 = pneg %p4541_p10  ;;  %p3797_p6 = scmp.lt.u32.totalorder %s4047_s20, %s4526_s2 }
  0x4f   : > { %p3798_p5 = scmp.lt.u32.totalorder %s3796_s25, %s3791_s21  ;;  %p3800_p9 = scmp.lt.u32.totalorder %s3791_s21, %s4047_s20 }
  0x50   : > { %p3794_p1 = pnand %p3792_p3, %p4542_p8 }
  0x51   : > { %p3799_p7 = por %p3798_p5, %p3797_p6 }
  0x52   : > { %p3795_p2 = pneg %p3794_p1 }
  0x53   : > { %p3801_p12 = por %p3800_p9, %p3799_p7 }
  0x55   : > { %p3802_p4 = pnand %p3801_p12, %p3795_p2 }
  0x57   : > { %3805 = shalt.err (!%p3802_p4)
}
  0x58   : > { %s3806_s6 = scalar_lea.vmem %s4049_s10, 64  ;;  %p4543_p11 = pmov %p4542_p8 }
  0x59   : > { %p3807_p0 = scmp.ne.s32.totalorder %s4049_s10, %s3806_s6  ;;  %s3898_s7 = smov [#allocation7]  }
  0x5a   : > { %s3811_s9 = sshll.u32 %s3898_s7, 4  ;;  %s3812_s9 = int_to_ptr.vmem [resolvable:$false] %s3811_s9 }
  0x5b   : > { %p3809_p13 = pnand %p3807_p0, %p4543_p11  ;;  %s3813_s8 = scalar_lea.vmem %s3812_s9, 128 }
  0x5c   : > { %p3814_p8 = scmp.lt.s32.totalorder %s4049_s10, %s3812_s9  ;;  %p3815_p1 = scmp.lt.s32.totalorder %s3813_s8, %s3806_s6 }
  0x5d   : > { %p3810_p3 = pneg %p3809_p13 }
  0x5e   : > { %p3816_p6 = por %p3815_p1, %p3814_p8 }
  0x60   : > { %p3817_p5 = pnand %p3816_p6, %p3810_p3 }
  0x62   : > { %3820 = shalt.err (!%p3817_p5)
}
  0x63   : > { %3206 = dma.hbm_to_vmem [thread:$0]  (!%p4541_p10), %s4047_s20, 64, %s4049_s10, %s3974_s30  }
  0x64   : > { %p4544_p2 = scmp.ne.s32.totalorder %s4539_s4, 0 }
  0x65   : > { %p4545_p7 = scmp.eq.s32.totalorder (!%p4544_p2), %s4003_s24, 0 }
  0x66   : > { %190 = sbr.rel (%p4544_p2) target bundleno = 673 (0x2a1), region = 32 }
  0x6d   : > { %3866 = dma.done.wait (%p4545_p7), [#allocation3], 160   ;;  %p4546_p9 = pmov %p4545_p7 }
  0x6e   : > { %s196_s17 = sand.u32 1, %s4003_s24   ;;  %s4099_s18 = sand.u32 1, %s3883_s13  }
  0x6f   : > { %3868 = vsyncadd (%p4546_p9), [#allocation3], 4294967136  ;;  %s3185_s27 = smul.u32 2560, %s4099_s18  ;;  %s197_s21 = scalar_lea.sflag [#allocation6], %s196_s17 }
  0x70   : > { %p4547_p10 = scmp.ne.s32.totalorder %s4536_s28, 0 }
  0x71   : > { %s4102_s22 = scalar_lea.vmem [#allocation5], %s3185_s27 }
  0x72   : > { %3870 = dma.done.wait (%p4547_p10), %s197_s21, 41024  }
  0x73   : > { %3872 = vsyncadd (%p4547_p10), %s197_s21, 4294926272  ;;  %v3252_v0 = vld [vmem:[%s4102_s22 + $0x4] ss:$16 sps:$4 sm:$0xff]   ;;  %v3254_v1 = vld [vmem:[%s4102_s22 + $0xc] ss:$16 sps:$4 sm:$0xff]   ;;  %v244_v36 = vlaneseq  ;;  %s2818_s30 = sshll.u32 %s4099_s18, 2 }
  0x74   : > { %2246 = vmatprep.subr.bf16.mxu0 %v3252_v0  ;;  %v3256_v2 = vld [vmem:[%s4102_s22] ss:$16 sps:$4 sm:$0xff]   ;;  %v3257_v3 = vld [vmem:[%s4102_s22 + $0x8] ss:$16 sps:$4 sm:$0xff]   ;;  %2451 = vmatprep.subr.bf16.mxu1 %v3254_v1  ;;  %v3258_v4 = vld [vmem:[%s4102_s22 + $0x24] ss:$16 sps:$4 sm:$0xff]  }
  0x75   : > { %2247 = vmatpush1.bf16.msra.mxu0 %v3256_v2  ;;  %2452 = vmatpush1.bf16.msra.mxu1 %v3257_v3  ;;  %v3260_v5 = vld [vmem:[%s4102_s22 + $0x2c] ss:$16 sps:$4 sm:$0xff]   ;;  %v3262_v6 = vld [vmem:[%s4102_s22 + $0x20] ss:$16 sps:$4 sm:$0xff]   ;;  %v3263_v7 = vld [vmem:[%s4102_s22 + $0x28] ss:$16 sps:$4 sm:$0xff]  }
  0x76   : > { %2248 = vmatprep.subr.bf16.mxu0 %v3258_v4  ;;  %2453 = vmatprep.subr.bf16.mxu1 %v3260_v5  ;;  %v3264_v8 = vld [vmem:[%s4102_s22 + $0x44] ss:$16 sps:$4 sm:$0xff]   ;;  %v3266_v9 = vld [vmem:[%s4102_s22 + $0x4c] ss:$16 sps:$4 sm:$0xff]   ;;  %v3268_v10 = vld [vmem:[%s4102_s22 + $0x40] ss:$16 sps:$4 sm:$0xff]  }
  0x77   : > { %v3269_v11 = vld [vmem:[%s4102_s22 + $0x48] ss:$16 sps:$4 sm:$0xff]   ;;  %v3270_v12 = vld [vmem:[%s4102_s22 + $0x64] ss:$16 sps:$4 sm:$0xff]   ;;  %v3272_v13 = vld [vmem:[%s4102_s22 + $0x6c] ss:$16 sps:$4 sm:$0xff]  }
  0x78   : > { %v3274_v14 = vld [vmem:[%s4102_s22 + $0x60] ss:$16 sps:$4 sm:$0xff]   ;;  %v3275_v15 = vld [vmem:[%s4102_s22 + $0x68] ss:$16 sps:$4 sm:$0xff]   ;;  %v3276_v16 = vld [vmem:[%s4102_s22 + $0x84] ss:$16 sps:$4 sm:$0xff]  }
  0x79   : > { %2249 = vmatpush1.bf16.msra.mxu0 %v3262_v6  ;;  %2454 = vmatpush1.bf16.msra.mxu1 %v3263_v7  ;;  %v3278_v17 = vld [vmem:[%s4102_s22 + $0x8c] ss:$16 sps:$4 sm:$0xff]   ;;  %v3280_v18 = vld [vmem:[%s4102_s22 + $0x80] ss:$16 sps:$4 sm:$0xff]   ;;  %v3281_v19 = vld [vmem:[%s4102_s22 + $0x88] ss:$16 sps:$4 sm:$0xff]  }
  0x7a   : > { %2250 = vmatprep.subr.bf16.mxu0 %v3264_v8  ;;  %2455 = vmatprep.subr.bf16.mxu1 %v3266_v9  ;;  %v3282_v20 = vld [vmem:[%s4102_s22 + $0xa4] ss:$16 sps:$4 sm:$0xff]   ;;  %v3284_v21 = vld [vmem:[%s4102_s22 + $0xac] ss:$16 sps:$4 sm:$0xff]   ;;  %v3286_v22 = vld [vmem:[%s4102_s22 + $0xa0] ss:$16 sps:$4 sm:$0xff]  }
  0x7b   : > { %v3287_v23 = vld [vmem:[%s4102_s22 + $0xa8] ss:$16 sps:$4 sm:$0xff]   ;;  %v3288_v24 = vld [vmem:[%s4102_s22 + $0xc4] ss:$16 sps:$4 sm:$0xff]   ;;  %v3290_v25 = vld [vmem:[%s4102_s22 + $0xcc] ss:$16 sps:$4 sm:$0xff]  }
  0x7c   : > { %v3292_v26 = vld [vmem:[%s4102_s22 + $0xc0] ss:$16 sps:$4 sm:$0xff]   ;;  %v3293_v27 = vld [vmem:[%s4102_s22 + $0xc8] ss:$16 sps:$4 sm:$0xff]   ;;  %v3294_v28 = vld [vmem:[%s4102_s22 + $0xe4] ss:$16 sps:$4 sm:$0xff]  }
  0x7d   : > { %2251 = vmatpush1.bf16.msra.mxu0 %v3268_v10  ;;  %2456 = vmatpush1.bf16.msra.mxu1 %v3269_v11  ;;  %v3296_v29 = vld [vmem:[%s4102_s22 + $0xec] ss:$16 sps:$4 sm:$0xff]   ;;  %v3298_v30 = vld [vmem:[%s4102_s22 + $0xe0] ss:$16 sps:$4 sm:$0xff]   ;;  %v3299_v31 = vld [vmem:[%s4102_s22 + $0xe8] ss:$16 sps:$4 sm:$0xff]  }
  0x7e   : > { %2252 = vmatprep.subr.bf16.mxu0 %v3270_v12  ;;  %2457 = vmatprep.subr.bf16.mxu1 %v3272_v13  ;;  %v3300_v32 = vld [vmem:[%s4102_s22 + $0x104] ss:$16 sps:$4 sm:$0xff]   ;;  %v3302_v33 = vld [vmem:[%s4102_s22 + $0x10c] ss:$16 sps:$4 sm:$0xff]   ;;  %v3304_v34 = vld [vmem:[%s4102_s22 + $0x100] ss:$16 sps:$4 sm:$0xff]  }
  0x7f   : > { %v3305_v35 = vld [vmem:[%s4102_s22 + $0x108] ss:$16 sps:$4 sm:$0xff]   ;;  %v3306_v37 = vld [vmem:[%s4102_s22 + $0x124] ss:$16 sps:$4 sm:$0xff]   ;;  %v3308_v38 = vld [vmem:[%s4102_s22 + $0x12c] ss:$16 sps:$4 sm:$0xff]  }
  0x80   : > { %v3310_v39 = vld [vmem:[%s4102_s22 + $0x120] ss:$16 sps:$4 sm:$0xff]   ;;  %v4148_v40 = vshrl.u32 %v244_v36, 7  ;;  %v3311_v41 = vld [vmem:[%s4102_s22 + $0x128] ss:$16 sps:$4 sm:$0xff]   ;;  %s209_s28 = scalar_lea.vmem [#allocation7], %s2818_s30 }
  0x81   : > { %2253 = vmatpush1.bf16.msra.mxu0 %v3274_v14  ;;  %2458 = vmatpush1.bf16.msra.mxu1 %v3275_v15  ;;  %v3312_v42 = vld [vmem:[%s4102_s22 + $0x144] ss:$16 sps:$4 sm:$0xff]   ;;  %v3314_v43 = vld [vmem:[%s4102_s22 + $0x14c] ss:$16 sps:$4 sm:$0xff]   ;;  %v3316_v44 = vld [vmem:[%s4102_s22 + $0x140] ss:$16 sps:$4 sm:$0xff]  }
  0x82   : > { %2254 = vmatprep.subr.bf16.mxu0 %v3276_v16  ;;  %2459 = vmatprep.subr.bf16.mxu1 %v3278_v17  ;;  %v3317_v45 = vld [vmem:[%s4102_s22 + $0x148] ss:$16 sps:$4 sm:$0xff]   ;;  %v4156_v46 = vsub.s32 1, %v4148_v40  ;;  %v3318_v47 = vld [vmem:[%s4102_s22 + $0x164] ss:$16 sps:$4 sm:$0xff]   ;;  %v4178_v1 = vsub.s32 0, %v4148_v40 }
  0x83   : > { %v3320_v48 = vld [vmem:[%s4102_s22 + $0x16c] ss:$16 sps:$4 sm:$0xff]   ;;  %v3322_v50 = vld [vmem:[%s4102_s22 + $0x160] ss:$16 sps:$4 sm:$0xff]   ;;  %v3323_v52 = vld [vmem:[%s4102_s22 + $0x168] ss:$16 sps:$4 sm:$0xff]  }
  0x84   : > { %v4160_v49 = vld [vmem:[#allocation2] sm:$0xff]  ;;  %v3328_v56 = vld [vmem:[%s4102_s22 + $0x180] ss:$16 sps:$4 sm:$0xff]   ;;  %v258_v5 = vsub.s32 3, %v4148_v40  ;;  %s3147_s4 = sshll.u32 %s4003_s24, 6  ;;  %s236_s10 = scalar_lea.vmem [#allocation8], %s2818_s30 }
  0x85   : > { %2255 = vmatpush1.bf16.msra.mxu0 %v3280_v18  ;;  %2460 = vmatpush1.bf16.msra.mxu1 %v3281_v19  ;;  %v251_v51 = vrot.slane %v4160_v49, %v4156_v46  ;;  %v3324_v53 = vld [vmem:[%s4102_s22 + $0x184] ss:$16 sps:$4 sm:$0xff]   ;;  %v3326_v54 = vld [vmem:[%s4102_s22 + $0x18c] ss:$16 sps:$4 sm:$0xff]   ;;  %v3329_v57 = vld [vmem:[%s4102_s22 + $0x188] ss:$16 sps:$4 sm:$0xff]   ;;  %v247_v7 = vrot.slane %v4160_v49, %v4178_v1  ;;  %s4480_s11 = scalar_lea.hbm %s4527_s3, %s3147_s4 }
  0x86   : > { %2256 = vmatprep.subr.bf16.mxu0 %v3282_v20  ;;  %2461 = vmatprep.subr.bf16.mxu1 %v3284_v21  ;;  %v3330_v58 = vld [vmem:[%s4102_s22 + $0x1a4] ss:$16 sps:$4 sm:$0xff]   ;;  %v3332_v59 = vld [vmem:[%s4102_s22 + $0x1ac] ss:$16 sps:$4 sm:$0xff]   ;;  %v3334_v60 = vld [vmem:[%s4102_s22 + $0x1a0] ss:$16 sps:$4 sm:$0xff]   ;;  %v259_v11 = vrot.slane %v4160_v49, %v258_v5 }
  0x87   : > { %v295_v55 = vpack.c.bf16 %v251_v51, %v251_v51  ;;  %v3335_v61 = vld [vmem:[%s4102_s22 + $0x1a8] ss:$16 sps:$4 sm:$0xff]   ;;  %v3336_v62 = vld [vmem:[%s4102_s22 + $0x1c4] ss:$16 sps:$4 sm:$0xff]   ;;  %v3338_v63 = vld [vmem:[%s4102_s22 + $0x1cc] ss:$16 sps:$4 sm:$0xff]   ;;  %v294_v13 = vpack.c.bf16 %v247_v7, %v247_v7 }
  0x88   : > { %v3340_v0 = vld [vmem:[%s4102_s22 + $0x1c0] ss:$16 sps:$4 sm:$0xff]   ;;  %v3341_v2 = vld [vmem:[%s4102_s22 + $0x1c8] ss:$16 sps:$4 sm:$0xff]   ;;  %v3342_v3 = vld [vmem:[%s4102_s22 + $0x1e4] ss:$16 sps:$4 sm:$0xff]   ;;  %v297_v17 = vpack.c.bf16 %v259_v11, %v259_v11 }
  0x89   : > { %2257 = vmatpush1.bf16.msra.mxu0 %v3286_v22  ;;  %2462 = vmatpush1.bf16.msra.mxu1 %v3287_v23  ;;  %v3344_v4 = vld [vmem:[%s4102_s22 + $0x1ec] ss:$16 sps:$4 sm:$0xff]   ;;  %v3346_v6 = vld [vmem:[%s4102_s22 + $0x1e0] ss:$16 sps:$4 sm:$0xff]   ;;  %v3347_v8 = vld [vmem:[%s4102_s22 + $0x1e8] ss:$16 sps:$4 sm:$0xff]  }
  0x8a   : > { %2258 = vmatprep.subr.bf16.mxu0 %v3288_v24  ;;  %2463 = vmatprep.subr.bf16.mxu1 %v3290_v25  ;;  %v3350_v9 = vld [vmem:[%s4102_s22 + $0x204] ss:$16 sps:$4 sm:$0xff]   ;;  %v3353_v10 = vld [vmem:[%s4102_s22 + $0x20c] ss:$16 sps:$4 sm:$0xff]   ;;  %v3348_v12 = vld [vmem:[%s4102_s22 + $0x200] ss:$16 sps:$4 sm:$0xff]  }
  0x8b   : > { %2278 = vmatprep.mubr.bf16.mxu0 %v295_v55  ;;  %2483 = vmatprep.mubr.bf16.mxu1 %v295_v55  ;;  %v3351_v14 = vld [vmem:[%s4102_s22 + $0x208] ss:$16 sps:$4 sm:$0xff]   ;;  %v3356_v15 = vld [vmem:[%s4102_s22 + $0x224] ss:$16 sps:$4 sm:$0xff]   ;;  %v3359_v16 = vld [vmem:[%s4102_s22 + $0x22c] ss:$16 sps:$4 sm:$0xff]  }
  0x8c   : > { %v3354_v18 = vld [vmem:[%s4102_s22 + $0x220] ss:$16 sps:$4 sm:$0xff]   ;;  %v3357_v19 = vld [vmem:[%s4102_s22 + $0x228] ss:$16 sps:$4 sm:$0xff]   ;;  %v3362_v20 = vld [vmem:[%s4102_s22 + $0x244] ss:$16 sps:$4 sm:$0xff]  }
  0x8d   : > { %2259 = vmatpush1.bf16.msra.mxu0 %v3292_v26  ;;  %2464 = vmatpush1.bf16.msra.mxu1 %v3293_v27  ;;  %v3365_v21 = vld [vmem:[%s4102_s22 + $0x24c] ss:$16 sps:$4 sm:$0xff]   ;;  %v3360_v22 = vld [vmem:[%s4102_s22 + $0x240] ss:$16 sps:$4 sm:$0xff]   ;;  %v3363_v23 = vld [vmem:[%s4102_s22 + $0x248] ss:$16 sps:$4 sm:$0xff]  }
  0x8e   : > { %2260 = vmatprep.subr.bf16.mxu0 %v3294_v28  ;;  %2465 = vmatprep.subr.bf16.mxu1 %v3296_v29  ;;  %v3368_v24 = vld [vmem:[%s4102_s22 + $0x264] ss:$16 sps:$4 sm:$0xff]   ;;  %v3371_v25 = vld [vmem:[%s4102_s22 + $0x26c] ss:$16 sps:$4 sm:$0xff]   ;;  %v3366_v26 = vld [vmem:[%s4102_s22 + $0x260] ss:$16 sps:$4 sm:$0xff]  }
  0x8f   : > { %v3369_v27 = vld [vmem:[%s4102_s22 + $0x268] ss:$16 sps:$4 sm:$0xff]   ;;  %v3374_v28 = vld [vmem:[%s4102_s22 + $0x284] ss:$16 sps:$4 sm:$0xff]   ;;  %v3377_v29 = vld [vmem:[%s4102_s22 + $0x28c] ss:$16 sps:$4 sm:$0xff]  }
  0x90   : > { %v3399_v51 = vld [vmem:[%s4102_s22 + $0x308] ss:$16 sps:$4 sm:$0xff]   ;;  %v3431_v7 = vld [vmem:[%s4102_s22 + $0x3ac] ss:$16 sps:$4 sm:$0xff]   ;;  %s2705_s20 = sshll.u32 %s236_s10, 4  ;;  %vm2687_vm0 = vcmp.lt.s32.totalorder %v244_v36, 512  ;;  %s4482_s20 = int_to_ptr.vmem [resolvable:$true] %s2705_s20 }
  0x91   : > { %2261 = vmatpush1.bf16.msra.mxu0 %v3298_v30  ;;  %2466 = vmatpush1.bf16.msra.mxu1 %v3299_v31  ;;  %v3372_v30 = vld [vmem:[%s4102_s22 + $0x280] ss:$16 sps:$4 sm:$0xff]   ;;  %v3375_v31 = vld [vmem:[%s4102_s22 + $0x288] ss:$16 sps:$4 sm:$0xff]   ;;  %v3437_v11 = vld [vmem:[%s4102_s22 + $0x3cc] ss:$16 sps:$4 sm:$0xff]  }
  0x92   : > { %2262 = vmatprep.subr.bf16.mxu0 %v3300_v32  ;;  %2467 = vmatprep.subr.bf16.mxu1 %v3302_v33  ;;  %v3380_v32 = vld [vmem:[%s4102_s22 + $0x2a4] ss:$16 sps:$4 sm:$0xff]   ;;  %v3383_v33 = vld [vmem:[%s4102_s22 + $0x2ac] ss:$16 sps:$4 sm:$0xff]   ;;  %v3405_v55 = vld [vmem:[%s4102_s22 + $0x328] ss:$16 sps:$4 sm:$0xff]  }
  0x93   : > { %s2691_s5 = scalar_lea.sflag [#allocation4], %s4099_s18  ;;  %s3821_s6 = scalar_lea.vmem %s4482_s20, 64 }
  0x94   : > { %p3822_p12 = scmp.ne.s32.totalorder %s4482_s20, %s3821_s6  ;;  %p4548_p4 = scmp.ne.s32.totalorder %s4537_s26, 0 }
  0x95   : > { %2263 = vmatpush1.bf16.msra.mxu0 %v3304_v34  ;;  %2468 = vmatpush1.bf16.msra.mxu1 %v3305_v35  ;;  %v3378_v34 = vld [vmem:[%s4102_s22 + $0x2a0] ss:$16 sps:$4 sm:$0xff]   ;;  %v3381_v35 = vld [vmem:[%s4102_s22 + $0x2a8] ss:$16 sps:$4 sm:$0xff]   ;;  %s3900_s24 = smov [#allocation8]  }
  0x96   : > { %2264 = vmatprep.subr.bf16.mxu0 %v3306_v37  ;;  %2469 = vmatprep.subr.bf16.mxu1 %v3308_v38  ;;  %v3386_v37 = vld [vmem:[%s4102_s22 + $0x2c4] ss:$16 sps:$4 sm:$0xff]   ;;  %v3389_v38 = vld [vmem:[%s4102_s22 + $0x2cc] ss:$16 sps:$4 sm:$0xff]   ;;  %p3823_p0 = pnand %p3822_p12, %p4548_p4  ;;  %s3825_s7 = sshll.u32 %s3900_s24, 4  ;;  %s3826_s7 = int_to_ptr.vmem [resolvable:$false] %s3825_s7 }
  0x97   : > { %s3827_s9 = scalar_lea.vmem %s3826_s7, 128  ;;  %p3828_p13 = scmp.lt.s32.totalorder %s4482_s20, %s3826_s7 }
  0x98   : > { %p3824_p11 = pneg %p3823_p0  ;;  %p3829_p3 = scmp.lt.s32.totalorder %s3827_s9, %s3821_s6 }
  0x99   : > { %2265 = vmatpush1.bf16.msra.mxu0 %v3310_v39  ;;  %2470 = vmatpush1.bf16.msra.mxu1 %v3311_v41  ;;  %v3384_v39 = vld [vmem:[%s4102_s22 + $0x2c0] ss:$16 sps:$4 sm:$0xff]   ;;  %v3387_v41 = vld [vmem:[%s4102_s22 + $0x2c8] ss:$16 sps:$4 sm:$0xff]  }
  0x9a   : > { %2266 = vmatprep.subr.bf16.mxu0 %v3312_v42  ;;  %2471 = vmatprep.subr.bf16.mxu1 %v3314_v43  ;;  %v3392_v42 = vld [vmem:[%s4102_s22 + $0x2e4] ss:$16 sps:$4 sm:$0xff]   ;;  %v3395_v43 = vld [vmem:[%s4102_s22 + $0x2ec] ss:$16 sps:$4 sm:$0xff]   ;;  %p3830_p8 = por %p3829_p3, %p3828_p13 }
  0x9c   : > { %p3831_p1 = pnand %p3830_p8, %p3824_p11 }
  0x9d   : > { %2267 = vmatpush1.bf16.msra.mxu0 %v3316_v44  ;;  %2472 = vmatpush1.bf16.msra.mxu1 %v3317_v45  ;;  %v3390_v44 = vld [vmem:[%s4102_s22 + $0x2e0] ss:$16 sps:$4 sm:$0xff]   ;;  %v3393_v45 = vld [vmem:[%s4102_s22 + $0x2e8] ss:$16 sps:$4 sm:$0xff]  }
  0x9e   : > { %2268 = vmatprep.subr.bf16.mxu0 %v3318_v47  ;;  %2473 = vmatprep.subr.bf16.mxu1 %v3320_v48  ;;  %v3398_v47 = vld [vmem:[%s4102_s22 + $0x304] ss:$16 sps:$4 sm:$0xff]   ;;  %v3401_v48 = vld [vmem:[%s4102_s22 + $0x30c] ss:$16 sps:$4 sm:$0xff]  }
  0xa1   : > { %2269 = vmatpush1.bf16.msra.mxu0 %v3322_v50  ;;  %2474 = vmatpush1.bf16.msra.mxu1 %v3323_v52  ;;  %v3396_v50 = vld [vmem:[%s4102_s22 + $0x300] ss:$16 sps:$4 sm:$0xff]   ;;  %v3404_v52 = vld [vmem:[%s4102_s22 + $0x324] ss:$16 sps:$4 sm:$0xff]  }
  0xa2   : > { %2270 = vmatprep.subr.bf16.mxu0 %v3324_v53  ;;  %2475 = vmatprep.subr.bf16.mxu1 %v3326_v54  ;;  %v3407_v53 = vld [vmem:[%s4102_s22 + $0x32c] ss:$16 sps:$4 sm:$0xff]   ;;  %v3402_v54 = vld [vmem:[%s4102_s22 + $0x320] ss:$16 sps:$4 sm:$0xff]  }
  0xa5   : > { %2271 = vmatpush1.bf16.msra.mxu0 %v3328_v56  ;;  %2476 = vmatpush1.bf16.msra.mxu1 %v3329_v57  ;;  %v3410_v56 = vld [vmem:[%s4102_s22 + $0x344] ss:$16 sps:$4 sm:$0xff]   ;;  %v3413_v57 = vld [vmem:[%s4102_s22 + $0x34c] ss:$16 sps:$4 sm:$0xff]  }
  0xa6   : > { %2272 = vmatprep.subr.bf16.mxu0 %v3330_v58  ;;  %2477 = vmatprep.subr.bf16.mxu1 %v3332_v59  ;;  %v3408_v58 = vld [vmem:[%s4102_s22 + $0x340] ss:$16 sps:$4 sm:$0xff]   ;;  %v3411_v59 = vld [vmem:[%s4102_s22 + $0x348] ss:$16 sps:$4 sm:$0xff]  }
  0xa9   : > { %2273 = vmatpush1.bf16.msra.mxu0 %v3334_v60  ;;  %2478 = vmatpush1.bf16.msra.mxu1 %v3335_v61  ;;  %v3416_v60 = vld [vmem:[%s4102_s22 + $0x364] ss:$16 sps:$4 sm:$0xff]   ;;  %v3419_v61 = vld [vmem:[%s4102_s22 + $0x36c] ss:$16 sps:$4 sm:$0xff]  }
  0xaa   : > { %2274 = vmatprep.subr.bf16.mxu0 %v3336_v62  ;;  %2479 = vmatprep.subr.bf16.mxu1 %v3338_v63  ;;  %v3414_v62 = vld [vmem:[%s4102_s22 + $0x360] ss:$16 sps:$4 sm:$0xff]   ;;  %v3417_v63 = vld [vmem:[%s4102_s22 + $0x368] ss:$16 sps:$4 sm:$0xff]  }
  0xad   : > { %2275 = vmatpush1.bf16.msra.mxu0 %v3340_v0  ;;  %2480 = vmatpush1.bf16.msra.mxu1 %v3341_v2  ;;  %v3422_v0 = vld [vmem:[%s4102_s22 + $0x384] ss:$16 sps:$4 sm:$0xff]   ;;  %v3425_v2 = vld [vmem:[%s4102_s22 + $0x38c] ss:$16 sps:$4 sm:$0xff]  }
  0xae   : > { %2276 = vmatprep.subr.bf16.mxu0 %v3342_v3  ;;  %2481 = vmatprep.subr.bf16.mxu1 %v3344_v4  ;;  %v3420_v3 = vld [vmem:[%s4102_s22 + $0x380] ss:$16 sps:$4 sm:$0xff]   ;;  %v3423_v4 = vld [vmem:[%s4102_s22 + $0x388] ss:$16 sps:$4 sm:$0xff]  }
  0xb1   : > { %2277 = vmatpush1.bf16.msra.mxu0 %v3346_v6  ;;  %2482 = vmatpush1.bf16.msra.mxu1 %v3347_v8  ;;  %v3428_v6 = vld [vmem:[%s4102_s22 + $0x3a4] ss:$16 sps:$4 sm:$0xff]   ;;  %v3426_v8 = vld [vmem:[%s4102_s22 + $0x3a0] ss:$16 sps:$4 sm:$0xff]  }
  0xb2   : > { %2287 = vmatprep.subr.bf16.mxu0 %v3350_v9  ;;  %2492 = vmatprep.subr.bf16.mxu1 %v3353_v10  ;;  %v3429_v9 = vld [vmem:[%s4102_s22 + $0x3a8] ss:$16 sps:$4 sm:$0xff]   ;;  %v3434_v10 = vld [vmem:[%s4102_s22 + $0x3c4] ss:$16 sps:$4 sm:$0xff]  }
  0xb4   : > { %2279 = vmatmul.mubr.bf16.vlgmr.msra.gmra.mrb[0].mxu0 %v294_v13  ;;  %2484 = vmatmul.mubr.bf16.vlgmr.msra.gmra.mrb[0].mxu1 %v294_v13  ;;  %v254_v13 = vsub.s32 2, %v4148_v40 }
  0xb5   : > { %2288 = vmatpush1.bf16.msra.mxu0 %v3348_v12  ;;  %2493 = vmatpush1.bf16.msra.mxu1 %v3351_v14  ;;  %v3432_v12 = vld [vmem:[%s4102_s22 + $0x3c0] ss:$16 sps:$4 sm:$0xff]   ;;  %v3435_v14 = vld [vmem:[%s4102_s22 + $0x3c8] ss:$16 sps:$4 sm:$0xff]  }
  0xb6   : > { %2289 = vmatprep.subr.bf16.mxu0 %v3356_v15  ;;  %2494 = vmatprep.subr.bf16.mxu1 %v3359_v16  ;;  %v3440_v15 = vld [vmem:[%s4102_s22 + $0x3e4] ss:$16 sps:$4 sm:$0xff]   ;;  %v3443_v16 = vld [vmem:[%s4102_s22 + $0x3ec] ss:$16 sps:$4 sm:$0xff]  }
  0xb7   : > { %2319 = vmatprep.mubr.bf16.mxu0 %v297_v17  ;;  %2524 = vmatprep.mubr.bf16.mxu1 %v297_v17  ;;  %v266_v17 = vsub.s32 5, %v4148_v40 }
  0xb9   : > { %2290 = vmatpush1.bf16.msra.mxu0 %v3354_v18  ;;  %2495 = vmatpush1.bf16.msra.mxu1 %v3357_v19  ;;  %v3438_v18 = vld [vmem:[%s4102_s22 + $0x3e0] ss:$16 sps:$4 sm:$0xff]   ;;  %v255_v19 = vrot.slane %v4160_v49, %v254_v13 }
  0xba   : > { %2291 = vmatprep.subr.bf16.mxu0 %v3362_v20  ;;  %2496 = vmatprep.subr.bf16.mxu1 %v3365_v21  ;;  %v3441_v20 = vld [vmem:[%s4102_s22 + $0x3e8] ss:$16 sps:$4 sm:$0xff]   ;;  %v3446_v21 = vld [vmem:[%s4102_s22 + $0x404] ss:$16 sps:$4 sm:$0xff]  }
  0xbd   : > { %2292 = vmatpush1.bf16.msra.mxu0 %v3360_v22  ;;  %2497 = vmatpush1.bf16.msra.mxu1 %v3363_v23  ;;  %v3449_v22 = vld [vmem:[%s4102_s22 + $0x40c] ss:$16 sps:$4 sm:$0xff]   ;;  %v267_v23 = vrot.slane %v4160_v49, %v266_v17  ;;  %v3453_v49 = vld [vmem:[%s4102_s22 + $0x428] ss:$16 sps:$4 sm:$0xff]  }
  0xbe   : > { %2293 = vmatprep.subr.bf16.mxu0 %v3368_v24  ;;  %2498 = vmatprep.subr.bf16.mxu1 %v3371_v25  ;;  %v3444_v24 = vld [vmem:[%s4102_s22 + $0x400] ss:$16 sps:$4 sm:$0xff]   ;;  %v296_v25 = vpack.c.bf16 %v255_v19, %v255_v19  ;;  %v3519_v17 = vld [vmem:[%s4102_s22 + $0x588] ss:$16 sps:$4 sm:$0xff]   ;;  %v3527_v19 = vld [vmem:[%s4102_s22 + $0x5ac] ss:$16 sps:$4 sm:$0xff]  }
  0xc1   : > { %2294 = vmatpush1.bf16.msra.mxu0 %v3366_v26  ;;  %2499 = vmatpush1.bf16.msra.mxu1 %v3369_v27  ;;  %v3447_v26 = vld [vmem:[%s4102_s22 + $0x408] ss:$16 sps:$4 sm:$0xff]   ;;  %v3452_v27 = vld [vmem:[%s4102_s22 + $0x424] ss:$16 sps:$4 sm:$0xff]  }
  0xc2   : > { %2295 = vmatprep.subr.bf16.mxu0 %v3374_v28  ;;  %2500 = vmatprep.subr.bf16.mxu1 %v3377_v29  ;;  %v3455_v28 = vld [vmem:[%s4102_s22 + $0x42c] ss:$16 sps:$4 sm:$0xff]   ;;  %v299_v29 = vpack.c.bf16 %v267_v23, %v267_v23 }
  0xc3   : > { %v3533_v23 = vld [vmem:[%s4102_s22 + $0x5cc] ss:$16 sps:$4 sm:$0xff]  }
  0xc5   : > { %2296 = vmatpush1.bf16.msra.mxu0 %v3372_v30  ;;  %2501 = vmatpush1.bf16.msra.mxu1 %v3375_v31  ;;  %v3450_v30 = vld [vmem:[%s4102_s22 + $0x420] ss:$16 sps:$4 sm:$0xff]   ;;  %v3458_v31 = vld [vmem:[%s4102_s22 + $0x444] ss:$16 sps:$4 sm:$0xff]  }
  0xc6   : > { %2297 = vmatprep.subr.bf16.mxu0 %v3380_v32  ;;  %2502 = vmatprep.subr.bf16.mxu1 %v3383_v33  ;;  %v3461_v32 = vld [vmem:[%s4102_s22 + $0x44c] ss:$16 sps:$4 sm:$0xff]   ;;  %v3456_v33 = vld [vmem:[%s4102_s22 + $0x440] ss:$16 sps:$4 sm:$0xff]  }
  0xc9   : > { %2298 = vmatpush1.bf16.msra.mxu0 %v3378_v34  ;;  %2503 = vmatpush1.bf16.msra.mxu1 %v3381_v35  ;;  %v3459_v34 = vld [vmem:[%s4102_s22 + $0x448] ss:$16 sps:$4 sm:$0xff]   ;;  %v3464_v35 = vld [vmem:[%s4102_s22 + $0x464] ss:$16 sps:$4 sm:$0xff]  }
  0xca   : > { %2299 = vmatprep.subr.bf16.mxu0 %v3386_v37  ;;  %2504 = vmatprep.subr.bf16.mxu1 %v3389_v38  ;;  %v3467_v37 = vld [vmem:[%s4102_s22 + $0x46c] ss:$16 sps:$4 sm:$0xff]   ;;  %v3462_v38 = vld [vmem:[%s4102_s22 + $0x460] ss:$16 sps:$4 sm:$0xff]  }
  0xcd   : > { %2300 = vmatpush1.bf16.msra.mxu0 %v3384_v39  ;;  %2505 = vmatpush1.bf16.msra.mxu1 %v3387_v41  ;;  %v3465_v39 = vld [vmem:[%s4102_s22 + $0x468] ss:$16 sps:$4 sm:$0xff]   ;;  %v3470_v41 = vld [vmem:[%s4102_s22 + $0x484] ss:$16 sps:$4 sm:$0xff]  }
  0xce   : > { %2301 = vmatprep.subr.bf16.mxu0 %v3392_v42  ;;  %2506 = vmatprep.subr.bf16.mxu1 %v3395_v43  ;;  %v3473_v42 = vld [vmem:[%s4102_s22 + $0x48c] ss:$16 sps:$4 sm:$0xff]   ;;  %v3468_v43 = vld [vmem:[%s4102_s22 + $0x480] ss:$16 sps:$4 sm:$0xff]  }
  0xd1   : > { %2302 = vmatpush1.bf16.msra.mxu0 %v3390_v44  ;;  %2507 = vmatpush1.bf16.msra.mxu1 %v3393_v45  ;;  %v3471_v44 = vld [vmem:[%s4102_s22 + $0x488] ss:$16 sps:$4 sm:$0xff]   ;;  %v3476_v45 = vld [vmem:[%s4102_s22 + $0x4a4] ss:$16 sps:$4 sm:$0xff]  }
  0xd2   : > { %2303 = vmatprep.subr.bf16.mxu0 %v3398_v47  ;;  %2508 = vmatprep.subr.bf16.mxu1 %v3401_v48  ;;  %v3479_v47 = vld [vmem:[%s4102_s22 + $0x4ac] ss:$16 sps:$4 sm:$0xff]   ;;  %v3474_v48 = vld [vmem:[%s4102_s22 + $0x4a0] ss:$16 sps:$4 sm:$0xff]  }
  0xd5   : > { %2304 = vmatpush1.bf16.msra.mxu0 %v3396_v50  ;;  %2509 = vmatpush1.bf16.msra.mxu1 %v3399_v51  ;;  %v3477_v50 = vld [vmem:[%s4102_s22 + $0x4a8] ss:$16 sps:$4 sm:$0xff]   ;;  %v3482_v51 = vld [vmem:[%s4102_s22 + $0x4c4] ss:$16 sps:$4 sm:$0xff]  }
  0xd6   : > { %2305 = vmatprep.subr.bf16.mxu0 %v3404_v52  ;;  %2510 = vmatprep.subr.bf16.mxu1 %v3407_v53  ;;  %v3485_v52 = vld [vmem:[%s4102_s22 + $0x4cc] ss:$16 sps:$4 sm:$0xff]   ;;  %v3480_v53 = vld [vmem:[%s4102_s22 + $0x4c0] ss:$16 sps:$4 sm:$0xff]  }
  0xd9   : > { %2306 = vmatpush1.bf16.msra.mxu0 %v3402_v54  ;;  %2511 = vmatpush1.bf16.msra.mxu1 %v3405_v55  ;;  %v3483_v54 = vld [vmem:[%s4102_s22 + $0x4c8] ss:$16 sps:$4 sm:$0xff]   ;;  %v3488_v55 = vld [vmem:[%s4102_s22 + $0x4e4] ss:$16 sps:$4 sm:$0xff]  }
  0xda   : > { %2307 = vmatprep.subr.bf16.mxu0 %v3410_v56  ;;  %2512 = vmatprep.subr.bf16.mxu1 %v3413_v57  ;;  %v3491_v56 = vld [vmem:[%s4102_s22 + $0x4ec] ss:$16 sps:$4 sm:$0xff]   ;;  %v3486_v57 = vld [vmem:[%s4102_s22 + $0x4e0] ss:$16 sps:$4 sm:$0xff]  }
  0xdd   : > { %2308 = vmatpush1.bf16.msra.mxu0 %v3408_v58  ;;  %2513 = vmatpush1.bf16.msra.mxu1 %v3411_v59  ;;  %v3489_v58 = vld [vmem:[%s4102_s22 + $0x4e8] ss:$16 sps:$4 sm:$0xff]   ;;  %v3494_v59 = vld [vmem:[%s4102_s22 + $0x504] ss:$16 sps:$4 sm:$0xff]  }
  0xde   : > { %2309 = vmatprep.subr.bf16.mxu0 %v3416_v60  ;;  %2514 = vmatprep.subr.bf16.mxu1 %v3419_v61  ;;  %v3497_v60 = vld [vmem:[%s4102_s22 + $0x50c] ss:$16 sps:$4 sm:$0xff]   ;;  %v3492_v61 = vld [vmem:[%s4102_s22 + $0x500] ss:$16 sps:$4 sm:$0xff]  }
  0xe1   : > { %2310 = vmatpush1.bf16.msra.mxu0 %v3414_v62  ;;  %2515 = vmatpush1.bf16.msra.mxu1 %v3417_v63  ;;  %v3495_v62 = vld [vmem:[%s4102_s22 + $0x508] ss:$16 sps:$4 sm:$0xff]   ;;  %v3500_v63 = vld [vmem:[%s4102_s22 + $0x524] ss:$16 sps:$4 sm:$0xff]  }
  0xe2   : > { %2311 = vmatprep.subr.bf16.mxu0 %v3422_v0  ;;  %2516 = vmatprep.subr.bf16.mxu1 %v3425_v2  ;;  %v3503_v0 = vld [vmem:[%s4102_s22 + $0x52c] ss:$16 sps:$4 sm:$0xff]   ;;  %v3498_v2 = vld [vmem:[%s4102_s22 + $0x520] ss:$16 sps:$4 sm:$0xff]  }
  0xe5   : > { %2312 = vmatpush1.bf16.msra.mxu0 %v3420_v3  ;;  %2517 = vmatpush1.bf16.msra.mxu1 %v3423_v4  ;;  %v3501_v3 = vld [vmem:[%s4102_s22 + $0x528] ss:$16 sps:$4 sm:$0xff]   ;;  %v3506_v4 = vld [vmem:[%s4102_s22 + $0x544] ss:$16 sps:$4 sm:$0xff]  }
  0xe6   : > { %2313 = vmatprep.subr.bf16.mxu0 %v3428_v6  ;;  %2518 = vmatprep.subr.bf16.mxu1 %v3431_v7  ;;  %v3509_v6 = vld [vmem:[%s4102_s22 + $0x54c] ss:$16 sps:$4 sm:$0xff]   ;;  %v3504_v7 = vld [vmem:[%s4102_s22 + $0x540] ss:$16 sps:$4 sm:$0xff]  }
  0xe9   : > { %2314 = vmatpush1.bf16.msra.mxu0 %v3426_v8  ;;  %2519 = vmatpush1.bf16.msra.mxu1 %v3429_v9  ;;  %v3507_v8 = vld [vmem:[%s4102_s22 + $0x548] ss:$16 sps:$4 sm:$0xff]   ;;  %v3512_v9 = vld [vmem:[%s4102_s22 + $0x564] ss:$16 sps:$4 sm:$0xff]  }
  0xea   : > { %2315 = vmatprep.subr.bf16.mxu0 %v3434_v10  ;;  %2520 = vmatprep.subr.bf16.mxu1 %v3437_v11  ;;  %v3515_v10 = vld [vmem:[%s4102_s22 + $0x56c] ss:$16 sps:$4 sm:$0xff]   ;;  %v3510_v11 = vld [vmem:[%s4102_s22 + $0x560] ss:$16 sps:$4 sm:$0xff]  }
  0xed   : > { %2316 = vmatpush1.bf16.msra.mxu0 %v3432_v12  ;;  %2521 = vmatpush1.bf16.msra.mxu1 %v3435_v14  ;;  %v3513_v12 = vld [vmem:[%s4102_s22 + $0x568] ss:$16 sps:$4 sm:$0xff]   ;;  %v3518_v14 = vld [vmem:[%s4102_s22 + $0x584] ss:$16 sps:$4 sm:$0xff]  }
  0xee   : > { %2317 = vmatprep.subr.bf16.mxu0 %v3440_v15  ;;  %2522 = vmatprep.subr.bf16.mxu1 %v3443_v16  ;;  %v3521_v15 = vld [vmem:[%s4102_s22 + $0x58c] ss:$16 sps:$4 sm:$0xff]   ;;  %v3516_v16 = vld [vmem:[%s4102_s22 + $0x580] ss:$16 sps:$4 sm:$0xff]  }
  0xf1   : > { %2318 = vmatpush1.bf16.msra.mxu0 %v3438_v18  ;;  %2523 = vmatpush1.bf16.msra.mxu1 %v3441_v20  ;;  %v3524_v18 = vld [vmem:[%s4102_s22 + $0x5a4] ss:$16 sps:$4 sm:$0xff]   ;;  %v3522_v20 = vld [vmem:[%s4102_s22 + $0x5a0] ss:$16 sps:$4 sm:$0xff]  }
  0xf2   : > { %2328 = vmatprep.subr.bf16.mxu0 %v3446_v21  ;;  %2533 = vmatprep.subr.bf16.mxu1 %v3449_v22  ;;  %v3525_v21 = vld [vmem:[%s4102_s22 + $0x5a8] ss:$16 sps:$4 sm:$0xff]   ;;  %v3530_v22 = vld [vmem:[%s4102_s22 + $0x5c4] ss:$16 sps:$4 sm:$0xff]  }
  0xf4   : > { %2320 = vmatmul.mubr.bf16.vlgmr.msra.gmra.mrb[0].mxu0 %v296_v25  ;;  %2525 = vmatmul.mubr.bf16.vlgmr.msra.gmra.mrb[0].mxu1 %v296_v25  ;;  %v262_v25 = vsub.s32 4, %v4148_v40 }
  0xf5   : > { %2329 = vmatpush1.bf16.msra.mxu0 %v3444_v24  ;;  %2534 = vmatpush1.bf16.msra.mxu1 %v3447_v26  ;;  %v3528_v24 = vld [vmem:[%s4102_s22 + $0x5c0] ss:$16 sps:$4 sm:$0xff]   ;;  %v3531_v26 = vld [vmem:[%s4102_s22 + $0x5c8] ss:$16 sps:$4 sm:$0xff]  }
  0xf6   : > { %2330 = vmatprep.subr.bf16.mxu0 %v3452_v27  ;;  %2535 = vmatprep.subr.bf16.mxu1 %v3455_v28  ;;  %v3536_v27 = vld [vmem:[%s4102_s22 + $0x5e4] ss:$16 sps:$4 sm:$0xff]   ;;  %v3539_v28 = vld [vmem:[%s4102_s22 + $0x5ec] ss:$16 sps:$4 sm:$0xff]  }
  0xf7   : > { %2360 = vmatprep.mubr.bf16.mxu0 %v299_v29  ;;  %2565 = vmatprep.mubr.bf16.mxu1 %v299_v29  ;;  %v274_v29 = vsub.s32 7, %v4148_v40 }
  0xf9   : > { %2331 = vmatpush1.bf16.msra.mxu0 %v3450_v30  ;;  %2536 = vmatpush1.bf16.msra.mxu1 %v3453_v49  ;;  %v3534_v30 = vld [vmem:[%s4102_s22 + $0x5e0] ss:$16 sps:$4 sm:$0xff]   ;;  %v4326_v49 = vld [vmem:[#allocation2] sm:$0xff] }
  0xfa   : > { %2332 = vmatprep.subr.bf16.mxu0 %v3458_v31  ;;  %2537 = vmatprep.subr.bf16.mxu1 %v3461_v32  ;;  %v263_v31 = vrot.slane %v4326_v49, %v262_v25  ;;  %v3537_v32 = vld [vmem:[%s4102_s22 + $0x5e8] ss:$16 sps:$4 sm:$0xff]   ;;  %v3606_v25 = vld [vmem:[%s4102_s22 + $0x760] ss:$16 sps:$4 sm:$0xff]  }
  0xfd   : > { %2333 = vmatpush1.bf16.msra.mxu0 %v3456_v33  ;;  %2538 = vmatpush1.bf16.msra.mxu1 %v3459_v34  ;;  %v3542_v33 = vld [vmem:[%s4102_s22 + $0x604] ss:$16 sps:$4 sm:$0xff]   ;;  %v3545_v34 = vld [vmem:[%s4102_s22 + $0x60c] ss:$16 sps:$4 sm:$0xff]  }
  0xfe   : > { %2334 = vmatprep.subr.bf16.mxu0 %v3464_v35  ;;  %2539 = vmatprep.subr.bf16.mxu1 %v3467_v37  ;;  %v275_v35 = vrot.slane %v4326_v49, %v274_v29  ;;  %v3540_v37 = vld [vmem:[%s4102_s22 + $0x600] ss:$16 sps:$4 sm:$0xff]  }
  0xff   : > { %v3612_v29 = vld [vmem:[%s4102_s22 + $0x780] ss:$16 sps:$4 sm:$0xff]  }
 0x101   : > { %2335 = vmatpush1.bf16.msra.mxu0 %v3462_v38  ;;  %2540 = vmatpush1.bf16.msra.mxu1 %v3465_v39  ;;  %v298_v38 = vpack.c.bf16 %v263_v31, %v263_v31  ;;  %v3543_v39 = vld [vmem:[%s4102_s22 + $0x608] ss:$16 sps:$4 sm:$0xff]   ;;  %v3620_v31 = vld [vmem:[%s4102_s22 + $0x7a4] ss:$16 sps:$4 sm:$0xff]  }
 0x102   : > { %2336 = vmatprep.subr.bf16.mxu0 %v3470_v41  ;;  %2541 = vmatprep.subr.bf16.mxu1 %v3473_v42  ;;  %v3548_v41 = vld [vmem:[%s4102_s22 + $0x624] ss:$16 sps:$4 sm:$0xff]   ;;  %v3551_v42 = vld [vmem:[%s4102_s22 + $0x62c] ss:$16 sps:$4 sm:$0xff]  }
 0x105   : > { %2337 = vmatpush1.bf16.msra.mxu0 %v3468_v43  ;;  %2542 = vmatpush1.bf16.msra.mxu1 %v3471_v44  ;;  %v301_v43 = vpack.c.bf16 %v275_v35, %v275_v35  ;;  %v3546_v44 = vld [vmem:[%s4102_s22 + $0x620] ss:$16 sps:$4 sm:$0xff]   ;;  %v3626_v35 = vld [vmem:[%s4102_s22 + $0x7c4] ss:$16 sps:$4 sm:$0xff]  }
 0x106   : > { %2338 = vmatprep.subr.bf16.mxu0 %v3476_v45  ;;  %2543 = vmatprep.subr.bf16.mxu1 %v3479_v47  ;;  %v3549_v45 = vld [vmem:[%s4102_s22 + $0x628] ss:$16 sps:$4 sm:$0xff]   ;;  %v3554_v47 = vld [vmem:[%s4102_s22 + $0x644] ss:$16 sps:$4 sm:$0xff]  }
 0x109   : > { %2339 = vmatpush1.bf16.msra.mxu0 %v3474_v48  ;;  %2544 = vmatpush1.bf16.msra.mxu1 %v3477_v50  ;;  %v3557_v48 = vld [vmem:[%s4102_s22 + $0x64c] ss:$16 sps:$4 sm:$0xff]   ;;  %v3552_v50 = vld [vmem:[%s4102_s22 + $0x640] ss:$16 sps:$4 sm:$0xff]  }
 0x10a   : > { %2340 = vmatprep.subr.bf16.mxu0 %v3482_v51  ;;  %2545 = vmatprep.subr.bf16.mxu1 %v3485_v52  ;;  %v3555_v51 = vld [vmem:[%s4102_s22 + $0x648] ss:$16 sps:$4 sm:$0xff]   ;;  %v3560_v52 = vld [vmem:[%s4102_s22 + $0x664] ss:$16 sps:$4 sm:$0xff]  }
 0x10d   : > { %2341 = vmatpush1.bf16.msra.mxu0 %v3480_v53  ;;  %2546 = vmatpush1.bf16.msra.mxu1 %v3483_v54  ;;  %v3563_v53 = vld [vmem:[%s4102_s22 + $0x66c] ss:$16 sps:$4 sm:$0xff]   ;;  %v3558_v54 = vld [vmem:[%s4102_s22 + $0x660] ss:$16 sps:$4 sm:$0xff]  }
 0x10e   : > { %2342 = vmatprep.subr.bf16.mxu0 %v3488_v55  ;;  %2547 = vmatprep.subr.bf16.mxu1 %v3491_v56  ;;  %v3561_v55 = vld [vmem:[%s4102_s22 + $0x668] ss:$16 sps:$4 sm:$0xff]   ;;  %v3566_v56 = vld [vmem:[%s4102_s22 + $0x684] ss:$16 sps:$4 sm:$0xff]  }
 0x111   : > { %2343 = vmatpush1.bf16.msra.mxu0 %v3486_v57  ;;  %2548 = vmatpush1.bf16.msra.mxu1 %v3489_v58  ;;  %v3569_v57 = vld [vmem:[%s4102_s22 + $0x68c] ss:$16 sps:$4 sm:$0xff]   ;;  %v3564_v58 = vld [vmem:[%s4102_s22 + $0x680] ss:$16 sps:$4 sm:$0xff]  }
 0x112   : > { %2344 = vmatprep.subr.bf16.mxu0 %v3494_v59  ;;  %2549 = vmatprep.subr.bf16.mxu1 %v3497_v60  ;;  %v3567_v59 = vld [vmem:[%s4102_s22 + $0x688] ss:$16 sps:$4 sm:$0xff]   ;;  %v3572_v60 = vld [vmem:[%s4102_s22 + $0x6a4] ss:$16 sps:$4 sm:$0xff]  }
 0x115   : > { %2345 = vmatpush1.bf16.msra.mxu0 %v3492_v61  ;;  %2550 = vmatpush1.bf16.msra.mxu1 %v3495_v62  ;;  %v3575_v61 = vld [vmem:[%s4102_s22 + $0x6ac] ss:$16 sps:$4 sm:$0xff]   ;;  %v3570_v62 = vld [vmem:[%s4102_s22 + $0x6a0] ss:$16 sps:$4 sm:$0xff]  }
 0x116   : > { %2346 = vmatprep.subr.bf16.mxu0 %v3500_v63  ;;  %2551 = vmatprep.subr.bf16.mxu1 %v3503_v0  ;;  %v3573_v63 = vld [vmem:[%s4102_s22 + $0x6a8] ss:$16 sps:$4 sm:$0xff]   ;;  %v3578_v0 = vld [vmem:[%s4102_s22 + $0x6c4] ss:$16 sps:$4 sm:$0xff]  }
 0x119   : > { %2347 = vmatpush1.bf16.msra.mxu0 %v3498_v2  ;;  %2552 = vmatpush1.bf16.msra.mxu1 %v3501_v3  ;;  %v3581_v2 = vld [vmem:[%s4102_s22 + $0x6cc] ss:$16 sps:$4 sm:$0xff]   ;;  %v3576_v3 = vld [vmem:[%s4102_s22 + $0x6c0] ss:$16 sps:$4 sm:$0xff]  }
 0x11a   : > { %2348 = vmatprep.subr.bf16.mxu0 %v3506_v4  ;;  %2553 = vmatprep.subr.bf16.mxu1 %v3509_v6  ;;  %v3579_v4 = vld [vmem:[%s4102_s22 + $0x6c8] ss:$16 sps:$4 sm:$0xff]   ;;  %v3584_v6 = vld [vmem:[%s4102_s22 + $0x6e4] ss:$16 sps:$4 sm:$0xff]  }
 0x11d   : > { %2349 = vmatpush1.bf16.msra.mxu0 %v3504_v7  ;;  %2554 = vmatpush1.bf16.msra.mxu1 %v3507_v8  ;;  %v3587_v7 = vld [vmem:[%s4102_s22 + $0x6ec] ss:$16 sps:$4 sm:$0xff]   ;;  %v3582_v8 = vld [vmem:[%s4102_s22 + $0x6e0] ss:$16 sps:$4 sm:$0xff]  }
 0x11e   : > { %2350 = vmatprep.subr.bf16.mxu0 %v3512_v9  ;;  %2555 = vmatprep.subr.bf16.mxu1 %v3515_v10  ;;  %v3585_v9 = vld [vmem:[%s4102_s22 + $0x6e8] ss:$16 sps:$4 sm:$0xff]   ;;  %v3590_v10 = vld [vmem:[%s4102_s22 + $0x704] ss:$16 sps:$4 sm:$0xff]  }
 0x121   : > { %2351 = vmatpush1.bf16.msra.mxu0 %v3510_v11  ;;  %2556 = vmatpush1.bf16.msra.mxu1 %v3513_v12  ;;  %v3593_v11 = vld [vmem:[%s4102_s22 + $0x70c] ss:$16 sps:$4 sm:$0xff]   ;;  %v3588_v12 = vld [vmem:[%s4102_s22 + $0x700] ss:$16 sps:$4 sm:$0xff]  }
 0x122   : > { %2352 = vmatprep.subr.bf16.mxu0 %v3518_v14  ;;  %2557 = vmatprep.subr.bf16.mxu1 %v3521_v15  ;;  %v3591_v14 = vld [vmem:[%s4102_s22 + $0x708] ss:$16 sps:$4 sm:$0xff]   ;;  %v3596_v15 = vld [vmem:[%s4102_s22 + $0x724] ss:$16 sps:$4 sm:$0xff]  }
 0x125   : > { %2353 = vmatpush1.bf16.msra.mxu0 %v3516_v16  ;;  %2558 = vmatpush1.bf16.msra.mxu1 %v3519_v17  ;;  %v3599_v16 = vld [vmem:[%s4102_s22 + $0x72c] ss:$16 sps:$4 sm:$0xff]   ;;  %v3594_v17 = vld [vmem:[%s4102_s22 + $0x720] ss:$16 sps:$4 sm:$0xff]  }
 0x126   : > { %2354 = vmatprep.subr.bf16.mxu0 %v3524_v18  ;;  %2559 = vmatprep.subr.bf16.mxu1 %v3527_v19  ;;  %v3597_v18 = vld [vmem:[%s4102_s22 + $0x728] ss:$16 sps:$4 sm:$0xff]   ;;  %v3602_v19 = vld [vmem:[%s4102_s22 + $0x744] ss:$16 sps:$4 sm:$0xff]  }
 0x129   : > { %2355 = vmatpush1.bf16.msra.mxu0 %v3522_v20  ;;  %2560 = vmatpush1.bf16.msra.mxu1 %v3525_v21  ;;  %v3605_v20 = vld [vmem:[%s4102_s22 + $0x74c] ss:$16 sps:$4 sm:$0xff]   ;;  %v3600_v21 = vld [vmem:[%s4102_s22 + $0x740] ss:$16 sps:$4 sm:$0xff]  }
 0x12a   : > { %2356 = vmatprep.subr.bf16.mxu0 %v3530_v22  ;;  %2561 = vmatprep.subr.bf16.mxu1 %v3533_v23  ;;  %v3603_v22 = vld [vmem:[%s4102_s22 + $0x748] ss:$16 sps:$4 sm:$0xff]   ;;  %v3608_v23 = vld [vmem:[%s4102_s22 + $0x764] ss:$16 sps:$4 sm:$0xff]  }
 0x12d   : > { %2357 = vmatpush1.bf16.msra.mxu0 %v3528_v24  ;;  %2562 = vmatpush1.bf16.msra.mxu1 %v3531_v26  ;;  %v3611_v24 = vld [vmem:[%s4102_s22 + $0x76c] ss:$16 sps:$4 sm:$0xff]   ;;  %v3609_v26 = vld [vmem:[%s4102_s22 + $0x768] ss:$16 sps:$4 sm:$0xff]  }
 0x12e   : > { %2358 = vmatprep.subr.bf16.mxu0 %v3536_v27  ;;  %2563 = vmatprep.subr.bf16.mxu1 %v3539_v28  ;;  %v3614_v27 = vld [vmem:[%s4102_s22 + $0x784] ss:$16 sps:$4 sm:$0xff]   ;;  %v3617_v28 = vld [vmem:[%s4102_s22 + $0x78c] ss:$16 sps:$4 sm:$0xff]  }
 0x131   : > { %2359 = vmatpush1.bf16.msra.mxu0 %v3534_v30  ;;  %2564 = vmatpush1.bf16.msra.mxu1 %v3537_v32  ;;  %v3615_v30 = vld [vmem:[%s4102_s22 + $0x788] ss:$16 sps:$4 sm:$0xff]   ;;  %v3623_v32 = vld [vmem:[%s4102_s22 + $0x7ac] ss:$16 sps:$4 sm:$0xff]  }
 0x132   : > { %2369 = vmatprep.subr.bf16.mxu0 %v3542_v33  ;;  %2574 = vmatprep.subr.bf16.mxu1 %v3545_v34  ;;  %v3618_v33 = vld [vmem:[%s4102_s22 + $0x7a0] ss:$16 sps:$4 sm:$0xff]   ;;  %v3621_v34 = vld [vmem:[%s4102_s22 + $0x7a8] ss:$16 sps:$4 sm:$0xff]  }
 0x134   : > { %2361 = vmatmul.mubr.bf16.vlgmr.msra.gmra.mrb[0].mxu0 %v298_v38  ;;  %2566 = vmatmul.mubr.bf16.vlgmr.msra.gmra.mrb[0].mxu1 %v298_v38  ;;  %v270_v38 = vsub.s32 6, %v4148_v40 }
 0x135   : > { %2370 = vmatpush1.bf16.msra.mxu0 %v3540_v37  ;;  %2575 = vmatpush1.bf16.msra.mxu1 %v3543_v39  ;;  %v3629_v37 = vld [vmem:[%s4102_s22 + $0x7cc] ss:$16 sps:$4 sm:$0xff]   ;;  %v3624_v39 = vld [vmem:[%s4102_s22 + $0x7c0] ss:$16 sps:$4 sm:$0xff]  }
 0x136   : > { %2371 = vmatprep.subr.bf16.mxu0 %v3548_v41  ;;  %2576 = vmatprep.subr.bf16.mxu1 %v3551_v42  ;;  %v3627_v41 = vld [vmem:[%s4102_s22 + $0x7c8] ss:$16 sps:$4 sm:$0xff]   ;;  %v3632_v42 = vld [vmem:[%s4102_s22 + $0x7e4] ss:$16 sps:$4 sm:$0xff]  }
 0x137   : > { %2401 = vmatprep.mubr.bf16.mxu0 %v301_v43  ;;  %2606 = vmatprep.mubr.bf16.mxu1 %v301_v43  ;;  %v3635_v43 = vld [vmem:[%s4102_s22 + $0x7ec] ss:$16 sps:$4 sm:$0xff]  }
 0x139   : > { %2372 = vmatpush1.bf16.msra.mxu0 %v3546_v44  ;;  %2577 = vmatpush1.bf16.msra.mxu1 %v3549_v45  ;;  %v271_v44 = vrot.slane %v4326_v49, %v270_v38  ;;  %v4395_v45 = vld [vmem:[#allocation2 + $0x8] sm:$0x3]  ;;  %v3636_v49 = vld [vmem:[%s4102_s22 + $0x800] ss:$16 sps:$4 sm:$0xff]  }
 0x13a   : > { %2373 = vmatprep.subr.bf16.mxu0 %v3554_v47  ;;  %2578 = vmatprep.subr.bf16.mxu1 %v3557_v48  ;;  %v3630_v47 = vld [vmem:[%s4102_s22 + $0x7e0] ss:$16 sps:$4 sm:$0xff]   ;;  %v3633_v48 = vld [vmem:[%s4102_s22 + $0x7e8] ss:$16 sps:$4 sm:$0xff]  }
 0x13b   : > { %v3702_v38 = vld [vmem:[%s4102_s22 + $0x960] ss:$16 sps:$4 sm:$0xff]  }
 0x13d   : > { %2374 = vmatpush1.bf16.msra.mxu0 %v3552_v50  ;;  %2579 = vmatpush1.bf16.msra.mxu1 %v3555_v51  ;;  %v3638_v50 = vld [vmem:[%s4102_s22 + $0x804] ss:$16 sps:$4 sm:$0xff]   ;;  %v3641_v51 = vld [vmem:[%s4102_s22 + $0x80c] ss:$16 sps:$4 sm:$0xff]  }
 0x13e   : > { %2375 = vmatprep.subr.bf16.mxu0 %v3560_v52  ;;  %2580 = vmatprep.subr.bf16.mxu1 %v3563_v53  ;;  %v283_v52 = vrot.slane %v4395_v45, %v4156_v46  ;;  %v300_v53 = vpack.c.bf16 %v271_v44, %v271_v44  ;;  %v3711_v44 = vld [vmem:[%s4102_s22 + $0x988] ss:$16 sps:$4 sm:$0xff]  }
 0x141   : > { %2376 = vmatpush1.bf16.msra.mxu0 %v3558_v54  ;;  %2581 = vmatpush1.bf16.msra.mxu1 %v3561_v55  ;;  %v3639_v54 = vld [vmem:[%s4102_s22 + $0x808] ss:$16 sps:$4 sm:$0xff]   ;;  %v3644_v55 = vld [vmem:[%s4102_s22 + $0x824] ss:$16 sps:$4 sm:$0xff]  }
 0x142   : > { %2377 = vmatprep.subr.bf16.mxu0 %v3566_v56  ;;  %2582 = vmatprep.subr.bf16.mxu1 %v3569_v57  ;;  %v3647_v56 = vld [vmem:[%s4102_s22 + $0x82c] ss:$16 sps:$4 sm:$0xff]   ;;  %v303_v57 = vpack.c.bf16 %v283_v52, %v283_v52  ;;  %v3722_v52 = vld [vmem:[%s4102_s22 + $0x9c4] ss:$16 sps:$4 sm:$0xff]  }
 0x145   : > { %2378 = vmatpush1.bf16.msra.mxu0 %v3564_v58  ;;  %2583 = vmatpush1.bf16.msra.mxu1 %v3567_v59  ;;  %v3642_v58 = vld [vmem:[%s4102_s22 + $0x820] ss:$16 sps:$4 sm:$0xff]   ;;  %v3645_v59 = vld [vmem:[%s4102_s22 + $0x828] ss:$16 sps:$4 sm:$0xff]  }
 0x146   : > { %2379 = vmatprep.subr.bf16.mxu0 %v3572_v60  ;;  %2584 = vmatprep.subr.bf16.mxu1 %v3575_v61  ;;  %v3650_v60 = vld [vmem:[%s4102_s22 + $0x844] ss:$16 sps:$4 sm:$0xff]   ;;  %v3653_v61 = vld [vmem:[%s4102_s22 + $0x84c] ss:$16 sps:$4 sm:$0xff]  }
 0x149   : > { %2380 = vmatpush1.bf16.msra.mxu0 %v3570_v62  ;;  %2585 = vmatpush1.bf16.msra.mxu1 %v3573_v63  ;;  %v3648_v62 = vld [vmem:[%s4102_s22 + $0x840] ss:$16 sps:$4 sm:$0xff]   ;;  %v3651_v63 = vld [vmem:[%s4102_s22 + $0x848] ss:$16 sps:$4 sm:$0xff]  }
 0x14a   : > { %2381 = vmatprep.subr.bf16.mxu0 %v3578_v0  ;;  %2586 = vmatprep.subr.bf16.mxu1 %v3581_v2  ;;  %v3656_v0 = vld [vmem:[%s4102_s22 + $0x864] ss:$16 sps:$4 sm:$0xff]   ;;  %v3659_v2 = vld [vmem:[%s4102_s22 + $0x86c] ss:$16 sps:$4 sm:$0xff]  }
 0x14d   : > { %2382 = vmatpush1.bf16.msra.mxu0 %v3576_v3  ;;  %2587 = vmatpush1.bf16.msra.mxu1 %v3579_v4  ;;  %v3654_v3 = vld [vmem:[%s4102_s22 + $0x860] ss:$16 sps:$4 sm:$0xff]   ;;  %v3657_v4 = vld [vmem:[%s4102_s22 + $0x868] ss:$16 sps:$4 sm:$0xff]  }
 0x14e   : > { %2383 = vmatprep.subr.bf16.mxu0 %v3584_v6  ;;  %2588 = vmatprep.subr.bf16.mxu1 %v3587_v7  ;;  %v3662_v6 = vld [vmem:[%s4102_s22 + $0x884] ss:$16 sps:$4 sm:$0xff]   ;;  %v3665_v7 = vld [vmem:[%s4102_s22 + $0x88c] ss:$16 sps:$4 sm:$0xff]  }
 0x151   : > { %2384 = vmatpush1.bf16.msra.mxu0 %v3582_v8  ;;  %2589 = vmatpush1.bf16.msra.mxu1 %v3585_v9  ;;  %v3660_v8 = vld [vmem:[%s4102_s22 + $0x880] ss:$16 sps:$4 sm:$0xff]   ;;  %v3663_v9 = vld [vmem:[%s4102_s22 + $0x888] ss:$16 sps:$4 sm:$0xff]  }
 0x152   : > { %2385 = vmatprep.subr.bf16.mxu0 %v3590_v10  ;;  %2590 = vmatprep.subr.bf16.mxu1 %v3593_v11  ;;  %v3668_v10 = vld [vmem:[%s4102_s22 + $0x8a4] ss:$16 sps:$4 sm:$0xff]   ;;  %v3671_v11 = vld [vmem:[%s4102_s22 + $0x8ac] ss:$16 sps:$4 sm:$0xff]  }
 0x155   : > { %2386 = vmatpush1.bf16.msra.mxu0 %v3588_v12  ;;  %2591 = vmatpush1.bf16.msra.mxu1 %v3591_v14  ;;  %v3666_v12 = vld [vmem:[%s4102_s22 + $0x8a0] ss:$16 sps:$4 sm:$0xff]   ;;  %v3669_v14 = vld [vmem:[%s4102_s22 + $0x8a8] ss:$16 sps:$4 sm:$0xff]  }
 0x156   : > { %2387 = vmatprep.subr.bf16.mxu0 %v3596_v15  ;;  %2592 = vmatprep.subr.bf16.mxu1 %v3599_v16  ;;  %v3674_v15 = vld [vmem:[%s4102_s22 + $0x8c4] ss:$16 sps:$4 sm:$0xff]   ;;  %v3677_v16 = vld [vmem:[%s4102_s22 + $0x8cc] ss:$16 sps:$4 sm:$0xff]  }
 0x159   : > { %2388 = vmatpush1.bf16.msra.mxu0 %v3594_v17  ;;  %2593 = vmatpush1.bf16.msra.mxu1 %v3597_v18  ;;  %v3672_v17 = vld [vmem:[%s4102_s22 + $0x8c0] ss:$16 sps:$4 sm:$0xff]   ;;  %v3675_v18 = vld [vmem:[%s4102_s22 + $0x8c8] ss:$16 sps:$4 sm:$0xff]  }
 0x15a   : > { %2389 = vmatprep.subr.bf16.mxu0 %v3602_v19  ;;  %2594 = vmatprep.subr.bf16.mxu1 %v3605_v20  ;;  %v3680_v19 = vld [vmem:[%s4102_s22 + $0x8e4] ss:$16 sps:$4 sm:$0xff]   ;;  %v3683_v20 = vld [vmem:[%s4102_s22 + $0x8ec] ss:$16 sps:$4 sm:$0xff]  }
 0x15d   : > { %2390 = vmatpush1.bf16.msra.mxu0 %v3600_v21  ;;  %2595 = vmatpush1.bf16.msra.mxu1 %v3603_v22  ;;  %v3678_v21 = vld [vmem:[%s4102_s22 + $0x8e0] ss:$16 sps:$4 sm:$0xff]   ;;  %v3681_v22 = vld [vmem:[%s4102_s22 + $0x8e8] ss:$16 sps:$4 sm:$0xff]  }
 0x15e   : > { %2391 = vmatprep.subr.bf16.mxu0 %v3608_v23  ;;  %2596 = vmatprep.subr.bf16.mxu1 %v3611_v24  ;;  %v3686_v23 = vld [vmem:[%s4102_s22 + $0x904] ss:$16 sps:$4 sm:$0xff]   ;;  %v3689_v24 = vld [vmem:[%s4102_s22 + $0x90c] ss:$16 sps:$4 sm:$0xff]  }
 0x161   : > { %2392 = vmatpush1.bf16.msra.mxu0 %v3606_v25  ;;  %2597 = vmatpush1.bf16.msra.mxu1 %v3609_v26  ;;  %v3684_v25 = vld [vmem:[%s4102_s22 + $0x900] ss:$16 sps:$4 sm:$0xff]   ;;  %v3687_v26 = vld [vmem:[%s4102_s22 + $0x908] ss:$16 sps:$4 sm:$0xff]  }
 0x162   : > { %2393 = vmatprep.subr.bf16.mxu0 %v3614_v27  ;;  %2598 = vmatprep.subr.bf16.mxu1 %v3617_v28  ;;  %v3692_v27 = vld [vmem:[%s4102_s22 + $0x924] ss:$16 sps:$4 sm:$0xff]   ;;  %v3695_v28 = vld [vmem:[%s4102_s22 + $0x92c] ss:$16 sps:$4 sm:$0xff]  }
 0x165   : > { %2394 = vmatpush1.bf16.msra.mxu0 %v3612_v29  ;;  %2599 = vmatpush1.bf16.msra.mxu1 %v3615_v30  ;;  %v3690_v29 = vld [vmem:[%s4102_s22 + $0x920] ss:$16 sps:$4 sm:$0xff]   ;;  %v3693_v30 = vld [vmem:[%s4102_s22 + $0x928] ss:$16 sps:$4 sm:$0xff]  }
 0x166   : > { %2395 = vmatprep.subr.bf16.mxu0 %v3620_v31  ;;  %2600 = vmatprep.subr.bf16.mxu1 %v3623_v32  ;;  %v3698_v31 = vld [vmem:[%s4102_s22 + $0x944] ss:$16 sps:$4 sm:$0xff]   ;;  %v3701_v32 = vld [vmem:[%s4102_s22 + $0x94c] ss:$16 sps:$4 sm:$0xff]  }
 0x169   : > { %2396 = vmatpush1.bf16.msra.mxu0 %v3618_v33  ;;  %2601 = vmatpush1.bf16.msra.mxu1 %v3621_v34  ;;  %v3696_v33 = vld [vmem:[%s4102_s22 + $0x940] ss:$16 sps:$4 sm:$0xff]   ;;  %v3699_v34 = vld [vmem:[%s4102_s22 + $0x948] ss:$16 sps:$4 sm:$0xff]  }
 0x16a   : > { %2397 = vmatprep.subr.bf16.mxu0 %v3626_v35  ;;  %2602 = vmatprep.subr.bf16.mxu1 %v3629_v37  ;;  %v3704_v35 = vld [vmem:[%s4102_s22 + $0x964] ss:$16 sps:$4 sm:$0xff]   ;;  %v3707_v37 = vld [vmem:[%s4102_s22 + $0x96c] ss:$16 sps:$4 sm:$0xff]  }
 0x16d   : > { %2398 = vmatpush1.bf16.msra.mxu0 %v3624_v39  ;;  %2603 = vmatpush1.bf16.msra.mxu1 %v3627_v41  ;;  %v3705_v39 = vld [vmem:[%s4102_s22 + $0x968] ss:$16 sps:$4 sm:$0xff]   ;;  %v3710_v41 = vld [vmem:[%s4102_s22 + $0x984] ss:$16 sps:$4 sm:$0xff]  }
 0x16e   : > { %2399 = vmatprep.subr.bf16.mxu0 %v3632_v42  ;;  %2604 = vmatprep.subr.bf16.mxu1 %v3635_v43  ;;  %v3713_v42 = vld [vmem:[%s4102_s22 + $0x98c] ss:$16 sps:$4 sm:$0xff]   ;;  %v3708_v43 = vld [vmem:[%s4102_s22 + $0x980] ss:$16 sps:$4 sm:$0xff]  }
 0x171   : > { %2400 = vmatpush1.bf16.msra.mxu0 %v3630_v47  ;;  %2605 = vmatpush1.bf16.msra.mxu1 %v3633_v48  ;;  %v3716_v47 = vld [vmem:[%s4102_s22 + $0x9a4] ss:$16 sps:$4 sm:$0xff]   ;;  %v3719_v48 = vld [vmem:[%s4102_s22 + $0x9ac] ss:$16 sps:$4 sm:$0xff]  }
 0x172   : > { %2410 = vmatprep.subr.bf16.mxu0 %v3638_v50  ;;  %2615 = vmatprep.subr.bf16.mxu1 %v3641_v51  ;;  %v3714_v50 = vld [vmem:[%s4102_s22 + $0x9a0] ss:$16 sps:$4 sm:$0xff]   ;;  %v3717_v51 = vld [vmem:[%s4102_s22 + $0x9a8] ss:$16 sps:$4 sm:$0xff]  }
 0x174   : > { %2402 = vmatmul.mubr.bf16.vlgmr.msra.gmra.mrb[0].mxu0 %v300_v53  ;;  %2607 = vmatmul.mubr.bf16.vlgmr.msra.gmra.mrb[0].mxu1 %v300_v53  ;;  %v3725_v53 = vld [vmem:[%s4102_s22 + $0x9cc] ss:$16 sps:$4 sm:$0xff]  }
 0x175   : > { %2411 = vmatpush1.bf16.msra.mxu0 %v3636_v49  ;;  %2616 = vmatpush1.bf16.msra.mxu1 %v3639_v54  ;;  %v3720_v49 = vld [vmem:[%s4102_s22 + $0x9c0] ss:$16 sps:$4 sm:$0xff]   ;;  %v3723_v54 = vld [vmem:[%s4102_s22 + $0x9c8] ss:$16 sps:$4 sm:$0xff]  }
 0x176   : > { %2412 = vmatprep.subr.bf16.mxu0 %v3644_v55  ;;  %2617 = vmatprep.subr.bf16.mxu1 %v3647_v56  ;;  %v3728_v55 = vld [vmem:[%s4102_s22 + $0x9e4] ss:$16 sps:$4 sm:$0xff]   ;;  %v3731_v56 = vld [vmem:[%s4102_s22 + $0x9ec] ss:$16 sps:$4 sm:$0xff]  }
 0x177   : > { %2442 = vmatprep.mubr.bf16.mxu0 %v303_v57  ;;  %2647 = vmatprep.mubr.bf16.mxu1 %v303_v57  ;;  %v279_v57 = vrot.slane %v4395_v45, %v4178_v1 }
 0x179   : > { %2413 = vmatpush1.bf16.msra.mxu0 %v3642_v58  ;;  %2618 = vmatpush1.bf16.msra.mxu1 %v3645_v59  ;;  %v3726_v58 = vld [vmem:[%s4102_s22 + $0x9e0] ss:$16 sps:$4 sm:$0xff]   ;;  %v3729_v59 = vld [vmem:[%s4102_s22 + $0x9e8] ss:$16 sps:$4 sm:$0xff]  }
 0x17a   : > { %2414 = vmatprep.subr.bf16.mxu0 %v3650_v60  ;;  %2619 = vmatprep.subr.bf16.mxu1 %v3653_v61  ;;  %v302_v60 = vpack.c.bf16 %v279_v57, %v279_v57  ;;  %v624_v61 = vld [vmem:[%s209_s28] sm:$0xf] }
 0x17b   : > { %v2237_v45 = vrot.slane %v624_v61, %v254_v13 }
 0x17d   : > { %2415 = vmatpush1.bf16.msra.mxu0 %v3648_v62  ;;  %2620 = vmatpush1.bf16.msra.mxu1 %v3651_v63  ;;  %v3899_v62 = vmov 1966171168  }
 0x17e   : > { %2416 = vmatprep.subr.bf16.mxu0 %v3656_v0  ;;  %2621 = vmatprep.subr.bf16.mxu1 %v3659_v2  ;;  %v2663_v63 = vunpack.c.l.s4 %v3899_v62  ;;  %v2229_v0 = vrot.slane %v624_v61, %v4178_v1  ;;  %v2233_v2 = vrot.slane %v624_v61, %v4156_v46 }
 0x181   : > { %2417 = vmatpush1.bf16.msra.mxu0 %v3654_v3  ;;  %2622 = vmatpush1.bf16.msra.mxu1 %v3657_v4  ;;  %v2664_v3 = vunpack.c.0.s8 %v2663_v63  ;;  %v2241_v4 = vrot.slane %v624_v61, %v258_v5 }
 0x182   : > { %2418 = vmatprep.subr.bf16.mxu0 %v3662_v6  ;;  %2623 = vmatprep.subr.bf16.mxu1 %v3665_v7 }
 0x185   : > { %2419 = vmatpush1.bf16.msra.mxu0 %v3660_v8  ;;  %2624 = vmatpush1.bf16.msra.mxu1 %v3663_v9 }
 0x186   : > { %2420 = vmatprep.subr.bf16.mxu0 %v3668_v10  ;;  %2625 = vmatprep.subr.bf16.mxu1 %v3671_v11 }
 0x189   : > { %2421 = vmatpush1.bf16.msra.mxu0 %v3666_v12  ;;  %2626 = vmatpush1.bf16.msra.mxu1 %v3669_v14  ;;  %v2667_v14 = vsub.s32 %v2664_v3, %v4148_v40 }
 0x18a   : > { %2422 = vmatprep.subr.bf16.mxu0 %v3674_v15  ;;  %2627 = vmatprep.subr.bf16.mxu1 %v3677_v16 }
 0x18d   : > { %2423 = vmatpush1.bf16.msra.mxu0 %v3672_v17  ;;  %2628 = vmatpush1.bf16.msra.mxu1 %v3675_v18 }
 0x18e   : > { %2424 = vmatprep.subr.bf16.mxu0 %v3680_v19  ;;  %2629 = vmatprep.subr.bf16.mxu1 %v3683_v20 }
 0x191   : > { %2425 = vmatpush1.bf16.msra.mxu0 %v3678_v21  ;;  %2630 = vmatpush1.bf16.msra.mxu1 %v3681_v22 }
 0x192   : > { %2426 = vmatprep.subr.bf16.mxu0 %v3686_v23  ;;  %2631 = vmatprep.subr.bf16.mxu1 %v3689_v24 }
 0x195   : > { %2427 = vmatpush1.bf16.msra.mxu0 %v3684_v25  ;;  %2632 = vmatpush1.bf16.msra.mxu1 %v3687_v26 }
 0x196   : > { %2428 = vmatprep.subr.bf16.mxu0 %v3692_v27  ;;  %2633 = vmatprep.subr.bf16.mxu1 %v3695_v28 }
 0x199   : > { %2429 = vmatpush1.bf16.msra.mxu0 %v3690_v29  ;;  %2634 = vmatpush1.bf16.msra.mxu1 %v3693_v30 }
 0x19a   : > { %2430 = vmatprep.subr.bf16.mxu0 %v3698_v31  ;;  %2635 = vmatprep.subr.bf16.mxu1 %v3701_v32 }
 0x19d   : > { %2431 = vmatpush1.bf16.msra.mxu0 %v3696_v33  ;;  %2636 = vmatpush1.bf16.msra.mxu1 %v3699_v34 }
 0x19e   : > { %2432 = vmatprep.subr.bf16.mxu0 %v3704_v35  ;;  %2637 = vmatprep.subr.bf16.mxu1 %v3707_v37 }
 0x1a1   : > { %2433 = vmatpush1.bf16.msra.mxu0 %v3702_v38  ;;  %2638 = vmatpush1.bf16.msra.mxu1 %v3705_v39 }
 0x1a2   : > { %2434 = vmatprep.subr.bf16.mxu0 %v3710_v41  ;;  %2639 = vmatprep.subr.bf16.mxu1 %v3713_v42 }
 0x1a5   : > { %2435 = vmatpush1.bf16.msra.mxu0 %v3708_v43  ;;  %2640 = vmatpush1.bf16.msra.mxu1 %v3711_v44 }
 0x1a6   : > { %2436 = vmatprep.subr.bf16.mxu0 %v3716_v47  ;;  %2641 = vmatprep.subr.bf16.mxu1 %v3719_v48 }
 0x1a9   : > { %2437 = vmatpush1.bf16.msra.mxu0 %v3714_v50  ;;  %2642 = vmatpush1.bf16.msra.mxu1 %v3717_v51 }
 0x1aa   : > { %2438 = vmatprep.subr.bf16.mxu0 %v3722_v52  ;;  %2643 = vmatprep.subr.bf16.mxu1 %v3725_v53 }
 0x1ad   : > { %2439 = vmatpush1.bf16.msra.mxu0 %v3720_v49  ;;  %2644 = vmatpush1.bf16.msra.mxu1 %v3723_v54 }
 0x1ae   : > { %2440 = vmatprep.subr.bf16.mxu0 %v3728_v55  ;;  %2645 = vmatprep.subr.bf16.mxu1 %v3731_v56 }
 0x1b1   : > { %2441 = vmatpush1.bf16.msra.mxu0 %v3726_v58  ;;  %2646 = vmatpush1.bf16.msra.mxu1 %v3729_v59 }
 0x1b4   : > { %2443 = vmatmul.mubr.bf16.vlgmr.msra.gmra.mrb[0].mxu0 %v302_v60  ;;  %2648 = vmatmul.mubr.bf16.vlgmr.msra.gmra.mrb[0].mxu1 %v302_v60 }
 0x287   : > { %v2444_v6 = vpop.f32.mrb[0].mxu0  ;;  %v2649_v7 = vpop.f32.mrb[0].mxu1 }
 0x288   : > { %v3148_v8 = vadd.f32 %v2444_v6, %v2229_v0  ;;  %v3150_v9 = vadd.f32 %v2649_v7, %v2237_v45  ;;  %v2446_v10 = vpop.f32.mrb[1].mxu0  ;;  %v2651_v11 = vpop.f32.mrb[1].mxu1 }
 0x289   : > { %v3149_v12 = vadd.f32 %v2446_v10, %v2233_v2  ;;  %v3151_v1 = vadd.f32 %v2651_v11, %v2241_v4  ;;  %v2448_v15 = vpop.f32.mrb[2].mxu0  ;;  %v2653_v16 = vpop.f32.mrb[2].mxu1 }
 0x28a   : > { %v2449_v13 = vpop.f32.mrb[3].mxu0  ;;  %v2654_v46 = vpop.f32.mrb[3].mxu1 }
 0x28b   : > { %v2660_v17 = vcombine.low %v3148_v8, %v3149_v12  ;;  %v2661_v18 = vcombine.low %v3150_v9, %v3151_v1 }
 0x28d   : > { %v2668_v5 = vrot.slane %v2660_v17, %v2667_v14  ;;  %v2675_v19 = vrot.slane %v2661_v18, %v2667_v14 }
 0x28f   : > { %v2676_v20 = vcombine.low %v2668_v5, %v2675_v19 }
 0x291   : > { %v2683_v21 = vrot.slane %v2676_v20, %v2667_v14 }
 0x293   : > { %2689 = vst.msk [vmem:[%s236_s10] sm:$0xf] %vm2687_vm0, %v2683_v21 }
 0x294   : > { %3834 = shalt.err (!%p3831_p1)
}
 0x295   : > { %s3835_s8 = scalar_lea.hbm %s4480_s11, 64  ;;  %s3839_s27 = scalar_lea.hbm %s4527_s3, 128 }
 0x296   : > { %p3836_p6 = scmp.ne.s32.totalorder %s4480_s11, %s3835_s8  ;;  %p3840_p7 = scmp.lt.u32.totalorder %s4480_s11, %s4527_s3 }
 0x297   : > { %p3841_p9 = scmp.lt.u32.totalorder %s3839_s27, %s3835_s8  ;;  %p3843_p12 = scmp.lt.u32.totalorder %s3835_s8, %s4480_s11 }
 0x298   : > { %p3837_p5 = pnand %p3836_p6, %p4548_p4 }
 0x299   : > { %p3842_p10 = por %p3841_p9, %p3840_p7 }
 0x29a   : > { %p3838_p2 = pneg %p3837_p5 }
 0x29b   : > { %p3844_p0 = por %p3843_p12, %p3842_p10 }
 0x29d   : > { %p3845_p11 = pnand %p3844_p0, %p3838_p2 }
 0x29f   : > { %3848 = shalt.err (!%p3845_p11)
}
 0x2a0   : > { %3194 = dma.vmem_to_hbm [thread:$0]  (%p4548_p4), %s4482_s20, 64, %s4480_s11, %s2691_s5  }
 0x2a1 PF: > { %s2717_s30 = sand.u32 1, %s3879_s12   ;;  %p4549_p13 = scmp.ne.s32.totalorder %s4538_s29, 0 }
 0x2a2   : > { %p4550_p3 = scmp.ge.s32.totalorder %s3891_s15, 2  ;;  %s2718_s28 = scalar_lea.sflag [#allocation4], %s2717_s30 }
 0x2a4   : > { %p3208_p8 = pnand %p4550_p3, %p4549_p13 }
 0x2a6   : > { %3874 = dma.done.wait (!%p3208_p8), %s2718_s28, 64  }
 0x2a7   : > { %3876 = vsyncadd (!%p3208_p8), %s2718_s28, 4294967232  ;;  %p17_p1 = scmp.ge.s32.totalorder %s3942_s16, 4   ;;  %s4551_s12 = smov %s3883_s13 }
 0x2a8   : > { %s4552_s13 = smov %s3887_s14  ;;  %s4553_s14 = smov %s3953_s19 }
 0x2a9   : > { %s4554_s15 = smov %s3942_s16  ;;  %19 = sbr.rel (!%p17_p1) target bundleno = 6 (0x6), region = 93 }
 0x2b0   :  { %2723 = vsyncpa [#allocation3], 1 }
 0x2b1   :  { %2725 = vsyncpa [#allocation3 + $0x1], 1 }
 0x2b2   :  { %2726 = vsyncpa [#allocation6], 1 }
 0x2b3   :  { %2728 = vsyncpa [#allocation6 + $0x1], 1 }
 0x2b4   :  { %2729 = vsyncpa [#allocation4], 1 }
 0x2b5   :  { %2731 = vsyncpa [#allocation4 + $0x1], 1 }

</bundles_post_ra>
